<compile_context>
chip_gen: v7x
topology: tpu7x:2x2x1
jax: 0.10.0
libtpu: 0.0.40
codegen_flags: <defaults>
</compile_context>

<pallas_src>
import functools
import math

import jax
import jax.numpy as jnp
from jax.experimental import pallas as pl
from jax.experimental.pallas import tpu as pltpu


def _layernorm(x, w, b, eps=1e-5):
    mu = jnp.mean(x, axis=-1, keepdims=True)
    xc = x - mu
    var = jnp.mean(xc * xc, axis=-1, keepdims=True)
    inv = jax.lax.rsqrt(var + eps)
    return xc * inv * w + b


# --------------------------------------------------------------------------------------
# Stage 1: QKV projections (run once per token; softmax scale pre-folded into Wq/bq).
# --------------------------------------------------------------------------------------
def qkv_projection_kernel(q_ref, k_ref, v_ref,
                          wq_ref, bq_ref, wk_ref, bk_ref, wv_ref, bv_ref,
                          qo_ref, ko_ref, vo_ref):
    f32 = jnp.float32
    # Single full-width (tile, D) @ (D, HQ) matmuls -> lane-dense bf16 outputs.
    qo_ref[0] = (jnp.dot(q_ref[0], wq_ref[...], preferred_element_type=f32)
                 + bq_ref[...]).astype(qo_ref.dtype)
    ko_ref[0] = (jnp.dot(k_ref[0], wk_ref[...], preferred_element_type=f32)
                 + bk_ref[...]).astype(ko_ref.dtype)
    vo_ref[0] = (jnp.dot(v_ref[0], wv_ref[...], preferred_element_type=f32)
                 + bv_ref[...]).astype(vo_ref.dtype)


# --------------------------------------------------------------------------------------
# Stage 2: flash attention (online softmax) + output projection + residual/LN + FFN + LN.
# --------------------------------------------------------------------------------------
def attention_ffn_kernel(
    x_ref, qh_ref, kh_ref, vh_ref,
    wo_ref, bo_ref, ln1w_ref, ln1b_ref,
    w1_ref, b1_ref, w2_ref, b2_ref, ln2w_ref, ln2b_ref,
    out_ref,
    m_sc, l_sc, acc_sc,
    *, head_count,
):
    f32, bf16 = jnp.float32, jnp.bfloat16
    H = head_count
    ki = pl.program_id(2)
    nk = pl.num_programs(2)

    @pl.when(ki == 0)
    def _init():
        m_sc[...] = jnp.full_like(m_sc, -jnp.inf)
        l_sc[...] = jnp.zeros_like(l_sc)
        acc_sc[...] = jnp.zeros_like(acc_sc)

    qh = qh_ref[0]                         # (H, tq, dq) bf16, softmax scale pre-folded
    kh = kh_ref[0]                         # (H, tk, dq) bf16
    vh = vh_ref[0]                         # (H, tk, dq) bf16

    # Attention scores for all heads at once; contraction on the last dim of both operands.
    s = jnp.einsum("hqf,hkf->hqk", qh, kh, preferred_element_type=f32)

    # Online softmax (flash-attention) update.
    m_prev = m_sc[...]
    m_new = jnp.maximum(m_prev, jnp.max(s, axis=-1, keepdims=True))
    alpha = jnp.exp(m_prev - m_new)
    p = jnp.exp(s - m_new)
    l_sc[...] = alpha * l_sc[...] + jnp.sum(p, axis=-1, keepdims=True)
    acc_sc[...] = alpha * acc_sc[...] + jnp.einsum(
        "hqk,hkf->hqf", p.astype(bf16), vh, preferred_element_type=f32)
    m_sc[...] = m_new

    @pl.when(ki == nk - 1)
    def _finalize():
        inv_l = pl.reciprocal(l_sc[...], approx=True)      # EUP slot
        o_heads = (acc_sc[...] * inv_l).astype(bf16)       # (H, tq, dq)

        # Output projection: head-by-head accumulation into a single (tq, D) f32 slab
        # (== concat(heads) @ Wo), avoiding an (H, tq, D) partial in registers.
        attn = jnp.dot(o_heads[0], wo_ref[0], preferred_element_type=f32)
        for h in range(1, H):
            attn = attn + jnp.dot(o_heads[h], wo_ref[h], preferred_element_type=f32)
        attn = attn + bo_ref[...]

        # Residual 1 + LayerNorm (dropout == identity in eval mode).
        x = _layernorm(x_ref[0] + attn, ln1w_ref[...], ln1b_ref[...])

        # FeedForward: Linear -> ReLU -> Linear (bf16 on the MXU, f32 accumulation).
        h1 = jnp.dot(x.astype(bf16), w1_ref[...], preferred_element_type=f32) + b1_ref[...]
        h1 = jnp.maximum(h1, 0.0)
        ff = jnp.dot(h1.astype(bf16), w2_ref[...], preferred_element_type=f32) + b2_ref[...]

        # Residual 2 + LayerNorm.
        out_ref[0] = _layernorm(x + ff, ln2w_ref[...], ln2b_ref[...]).astype(out_ref.dtype)


def transformer_block(q, k, v, params, *, head_count, qkv_dim,
                      tile_q=256, tile_k=512, tile_proj=256,
                      vmem_limit_bytes=48 * 1024 * 1024):
    B, S, D = q.shape
    H, dq = head_count, qkv_dim
    HQ = H * dq
    bf16, f32 = jnp.bfloat16, jnp.float32

    tq = min(tile_q, S)
    tk = min(tile_k, S)
    tp = min(tile_proj, S)
    assert S % tq == 0 and S % tk == 0 and S % tp == 0, \
        "sequence length must be divisible by the tile sizes"
    nq, nk, nproj = S // tq, S // tk, S // tp

    scale = 1.0 / math.sqrt(dq)

    # ---- Stage 1: project Q/K/V once (scale folded into Wq/bq), bf16 inputs/weights ----
    wq = (params["wq"] * scale).astype(bf16)
    bq = (params["bq"] * scale).astype(f32)
    wk = params["wk"].astype(bf16)
    bk = params["bk"].astype(f32)
    wv = params["wv"].astype(bf16)
    bv = params["bv"].astype(f32)

    q_bf, k_bf, v_bf = q.astype(bf16), k.astype(bf16), v.astype(bf16)

    x_spec = pl.BlockSpec((1, tp, D), lambda b, si: (b, si, 0))
    proj_out_spec = pl.BlockSpec((1, tp, HQ), lambda b, si: (b, si, 0))

    def full2(a):
        return pl.BlockSpec(a.shape, lambda b, si: (0, 0))

    qp, kp, vp = pl.pallas_call(
        qkv_projection_kernel,
        out_shape=[jax.ShapeDtypeStruct((B, S, HQ), bf16)] * 3,
        grid_spec=pltpu.PrefetchScalarGridSpec(
            num_scalar_prefetch=0,
            grid=(B, nproj),
            in_specs=[x_spec, x_spec, x_spec,
                      full2(wq), full2(bq), full2(wk), full2(bk), full2(wv), full2(bv)],
            out_specs=[proj_out_spec, proj_out_spec, proj_out_spec],
        ),
        compiler_params=pltpu.CompilerParams(
            dimension_semantics=("parallel", "parallel"),
            vmem_limit_bytes=vmem_limit_bytes),
    )(q_bf, k_bf, v_bf, wq, bq, wk, bk, wv, bv)

    # One-time head split in HBM (plain XLA) so kernel tiles need no in-kernel relayout.
    def split_heads(x):  # (B, S, HQ) -> (B, H, S, dq)
        return x.reshape(B, S, H, dq).transpose(0, 2, 1, 3)

    q_heads, k_heads, v_heads = split_heads(qp), split_heads(kp), split_heads(vp)

    # ---- Stage 2: fused flash attention + residual/LN + FFN + residual/LN ----
    attn_weights = [
        params["wo"].reshape(H, dq, D).astype(bf16), params["bo"].astype(f32),
        params["ln1w"].astype(f32), params["ln1b"].astype(f32),
        params["w1"].astype(bf16), params["b1"].astype(f32),
        params["w2"].astype(bf16), params["b2"].astype(f32),
        params["ln2w"].astype(f32), params["ln2b"].astype(f32),
    ]

    x_res_spec = pl.BlockSpec((1, tq, D), lambda b, qi, ki: (b, qi, 0))
    qh_spec = pl.BlockSpec((1, H, tq, dq), lambda b, qi, ki: (b, 0, qi, 0))
    kv_spec = pl.BlockSpec((1, H, tk, dq), lambda b, qi, ki: (b, 0, ki, 0))
    out_spec = pl.BlockSpec((1, tq, D), lambda b, qi, ki: (b, qi, 0))

    def full_spec(a):
        nd = a.ndim
        return pl.BlockSpec(a.shape, lambda b, qi, ki, _nd=nd: (0,) * _nd)

    kernel = functools.partial(attention_ffn_kernel, head_count=H)

    grid_spec = pltpu.PrefetchScalarGridSpec(
        num_scalar_prefetch=0,
        grid=(B, nq, nk),
        in_specs=[x_res_spec, qh_spec, kv_spec, kv_spec]
                 + [full_spec(w) for w in attn_weights],
        out_specs=out_spec,
        scratch_shapes=[
            pltpu.VMEM((H, tq, 1), f32),     # running softmax max
            pltpu.VMEM((H, tq, 1), f32),     # running softmax denominator
            pltpu.VMEM((H, tq, dq), f32),    # un-normalized attention accumulator
        ],
    )

    return pl.pallas_call(
        kernel,
        out_shape=jax.ShapeDtypeStruct((B, S, D), jnp.float32),
        grid_spec=grid_spec,
        compiler_params=pltpu.CompilerParams(
            dimension_semantics=("parallel", "parallel", "arbitrary"),
            vmem_limit_bytes=vmem_limit_bytes),
    )(q, q_heads, k_heads, v_heads, *attn_weights)


def init_params(key, input_feature_count, head_count, ff_hidden):
    D = input_feature_count
    dq = max(D // head_count, 1)
    HQ = head_count * dq
    keys = jax.random.split(key, 12)

    def lin(kw, kb, fan_in, shape_w, shape_b):
        bound = 1.0 / math.sqrt(fan_in)
        w = jax.random.uniform(kw, shape_w, jnp.float32, -bound, bound)
        b = jax.random.uniform(kb, shape_b, jnp.float32, -bound, bound)
        return w, b

    wq, bq = lin(keys[0], keys[1], D, (D, HQ), (1, HQ))
    wk, bk = lin(keys[2], keys[3], D, (D, HQ), (1, HQ))
    wv, bv = lin(keys[4], keys[5], D, (D, HQ), (1, HQ))
    wo, bo = lin(keys[6], keys[7], HQ, (HQ, D), (1, D))
    w1, b1 = lin(keys[8], keys[9], D, (D, ff_hidden), (1, ff_hidden))
    w2, b2 = lin(keys[10], keys[11], ff_hidden, (ff_hidden, D), (1, D))
    params = dict(
        wq=wq, bq=bq, wk=wk, bk=bk, wv=wv, bv=bv, wo=wo, bo=bo,
        ln1w=jnp.ones((1, D), jnp.float32), ln1b=jnp.zeros((1, D), jnp.float32),
        w1=w1, b1=b1, w2=w2, b2=b2,
        ln2w=jnp.ones((1, D), jnp.float32), ln2b=jnp.zeros((1, D), jnp.float32),
    )
    return params, dq


def reference_block(q, k, v, p, *, head_count, qkv_dim):
    # Pure-JAX reference with the same precision policy as the kernel
    # (bf16 matmul operands, f32 accumulation / softmax / LayerNorm).
    f32, bf16 = jnp.float32, jnp.bfloat16

    def mm(a, w):
        return jnp.dot(a.astype(bf16), w.astype(bf16), preferred_element_type=f32)

    def ln(x, w, b, eps=1e-5):
        mu = jnp.mean(x, -1, keepdims=True)
        var = jnp.mean((x - mu) ** 2, -1, keepdims=True)
        return (x - mu) / jnp.sqrt(var + eps) * w + b

    qp = mm(q, p["wq"]) + p["bq"]
    kp = mm(k, p["wk"]) + p["bk"]
    vp = mm(v, p["wv"]) + p["bv"]
    outs = []
    for h in range(head_count):
        sl = slice(h * qkv_dim, (h + 1) * qkv_dim)
        s = jnp.einsum("bqd,bkd->bqk", qp[..., sl].astype(bf16), kp[..., sl].astype(bf16),
                       preferred_element_type=f32) / math.sqrt(qkv_dim)
        pr = jax.nn.softmax(s, axis=-1)
        outs.append(jnp.einsum("bqk,bkd->bqd", pr.astype(bf16), vp[..., sl].astype(bf16),
                               preferred_element_type=f32))
    attn = mm(jnp.concatenate(outs, -1), p["wo"]) + p["bo"]
    x = ln(q + attn, p["ln1w"], p["ln1b"])
    ff = mm(jnp.maximum(mm(x, p["w1"]) + p["b1"], 0.0), p["w2"]) + p["b2"]
    return ln(x + ff, p["ln2w"], p["ln2b"])


if __name__ == "__main__":
    # Small but lane-/MXU-friendly shapes: D, HQ, ff_hidden multiples of 128, S tiled by 128.
    B, S, D = 2, 256, 128
    head_count = 4
    ff_hidden = 256

    key = jax.random.PRNGKey(0)
    kq, kk, kv, kp = jax.random.split(key, 4)
    q = jax.random.normal(kq, (B, S, D), jnp.float32)
    k = jax.random.normal(kk, (B, S, D), jnp.float32)
    v = jax.random.normal(kv, (B, S, D), jnp.float32)

    params, qkv_dim = init_params(kp, D, head_count, ff_hidden)

    out = transformer_block(q, k, v, params, head_count=head_count, qkv_dim=qkv_dim)
    out = jax.block_until_ready(out)

    ref = reference_block(q, k, v, params, head_count=head_count, qkv_dim=qkv_dim)
    assert out.shape == (B, S, D)
    max_err = float(jnp.max(jnp.abs(out - ref)))
    assert jnp.allclose(out, ref, atol=3e-2, rtol=3e-2), (
        f"mismatch vs JAX reference (max abs err {max_err})")

    print("KERNEL_OK")
</pallas_src>

<mosaic_0001>
module attributes {stable_mosaic.version = 11 : i64} {
  func.func @qkv_projection_kernel(%arg0: i32, %arg1: i32, %arg2: memref<1x256x128xbf16, #tpu.memory_space<vmem>>, %arg3: memref<1x256x128xbf16, #tpu.memory_space<vmem>>, %arg4: memref<1x256x128xbf16, #tpu.memory_space<vmem>>, %arg5: memref<128x128xbf16, #tpu.memory_space<vmem>>, %arg6: memref<1x128xf32, #tpu.memory_space<vmem>>, %arg7: memref<128x128xbf16, #tpu.memory_space<vmem>>, %arg8: memref<1x128xf32, #tpu.memory_space<vmem>>, %arg9: memref<128x128xbf16, #tpu.memory_space<vmem>>, %arg10: memref<1x128xf32, #tpu.memory_space<vmem>>, %arg11: memref<1x256x128xbf16, #tpu.memory_space<vmem>>, %arg12: memref<1x256x128xbf16, #tpu.memory_space<vmem>>, %arg13: memref<1x256x128xbf16, #tpu.memory_space<vmem>>) attributes {dimension_semantics = [#tpu.dimension_semantics<parallel>, #tpu.dimension_semantics<parallel>], iteration_bounds = array<i64: 2, 1>, scalar_prefetch = 0 : i64, scratch_operands = 0 : i64, tpu.core_type = #tpu.core_type<tc>, window_params = [{transform_indices = @transform_0, window_bounds = array<i64: 1, 256, 128>}, {transform_indices = @transform_1, window_bounds = array<i64: 1, 256, 128>}, {transform_indices = @transform_2, window_bounds = array<i64: 1, 256, 128>}, {pipeline_mode = #tpu.pipeline_mode<synchronous>, transform_indices = @transform_3, window_bounds = array<i64: 128, 128>}, {pipeline_mode = #tpu.pipeline_mode<synchronous>, transform_indices = @transform_4, window_bounds = array<i64: 1, 128>}, {pipeline_mode = #tpu.pipeline_mode<synchronous>, transform_indices = @transform_5, window_bounds = array<i64: 128, 128>}, {pipeline_mode = #tpu.pipeline_mode<synchronous>, transform_indices = @transform_6, window_bounds = array<i64: 1, 128>}, {pipeline_mode = #tpu.pipeline_mode<synchronous>, transform_indices = @transform_7, window_bounds = array<i64: 128, 128>}, {pipeline_mode = #tpu.pipeline_mode<synchronous>, transform_indices = @transform_8, window_bounds = array<i64: 1, 128>}, {transform_indices = @transform_9, window_bounds = array<i64: 1, 256, 128>}, {transform_indices = @transform_10, window_bounds = array<i64: 1, 256, 128>}, {transform_indices = @transform_11, window_bounds = array<i64: 1, 256, 128>}]} {
    %c0 = arith.constant 0 : index
    %c0_0 = arith.constant 0 : index
    %c0_1 = arith.constant 0 : index
    %0 = vector.load %arg2[%c0, %c0_0, %c0_1] : memref<1x256x128xbf16, #tpu.memory_space<vmem>>, vector<1x256x128xbf16>
    %1 = vector.shape_cast %0 : vector<1x256x128xbf16> to vector<256x128xbf16>
    %c0_2 = arith.constant 0 : index
    %c0_3 = arith.constant 0 : index
    %2 = vector.load %arg5[%c0_2, %c0_3] : memref<128x128xbf16, #tpu.memory_space<vmem>>, vector<128x128xbf16>
    %cst = arith.constant dense<0.000000e+00> : vector<256x128xf32>
    %3 = tpu.matmul %1, %2, %cst {dimension_numbers = #tpu.dot_dimension_numbers<[1], [0], [0], [1], [0, 0, 1, 1], [], []>} : vector<256x128xbf16>, vector<128x128xbf16>, vector<256x128xf32> -> vector<256x128xf32>
    %c0_4 = arith.constant 0 : index
    %c0_5 = arith.constant 0 : index
    %4 = vector.load %arg6[%c0_4, %c0_5] : memref<1x128xf32, #tpu.memory_space<vmem>>, vector<1x128xf32>
    %5 = vector.broadcast %4 : vector<1x128xf32> to vector<256x128xf32>
    %6 = arith.addf %3, %5 : vector<256x128xf32>
    %7 = arith.truncf %6 : vector<256x128xf32> to vector<256x128xbf16>
    %c0_6 = arith.constant 0 : index
    %c0_7 = arith.constant 0 : index
    %c0_8 = arith.constant 0 : index
    %8 = vector.load %arg11[%c0_6, %c0_7, %c0_8] : memref<1x256x128xbf16, #tpu.memory_space<vmem>>, vector<1x256x128xbf16>
    %9 = vector.shape_cast %8 : vector<1x256x128xbf16> to vector<256x128xbf16>
    %10 = vector.shape_cast %7 : vector<256x128xbf16> to vector<1x256x128xbf16>
    tpu.vector_store %arg11[%c0_6, %c0_7, %c0_8], %10 {strides = array<i32>} : memref<1x256x128xbf16, #tpu.memory_space<vmem>>, vector<1x256x128xbf16>,
    %c0_9 = arith.constant 0 : index
    %c0_10 = arith.constant 0 : index
    %c0_11 = arith.constant 0 : index
    %11 = vector.load %arg3[%c0_9, %c0_10, %c0_11] : memref<1x256x128xbf16, #tpu.memory_space<vmem>>, vector<1x256x128xbf16>
    %12 = vector.shape_cast %11 : vector<1x256x128xbf16> to vector<256x128xbf16>
    %c0_12 = arith.constant 0 : index
    %c0_13 = arith.constant 0 : index
    %13 = vector.load %arg7[%c0_12, %c0_13] : memref<128x128xbf16, #tpu.memory_space<vmem>>, vector<128x128xbf16>
    %cst_14 = arith.constant dense<0.000000e+00> : vector<256x128xf32>
    %14 = tpu.matmul %12, %13, %cst_14 {dimension_numbers = #tpu.dot_dimension_numbers<[1], [0], [0], [1], [0, 0, 1, 1], [], []>} : vector<256x128xbf16>, vector<128x128xbf16>, vector<256x128xf32> -> vector<256x128xf32>
    %c0_15 = arith.constant 0 : index
    %c0_16 = arith.constant 0 : index
    %15 = vector.load %arg8[%c0_15, %c0_16] : memref<1x128xf32, #tpu.memory_space<vmem>>, vector<1x128xf32>
    %16 = vector.broadcast %15 : vector<1x128xf32> to vector<256x128xf32>
    %17 = arith.addf %14, %16 : vector<256x128xf32>
    %18 = arith.truncf %17 : vector<256x128xf32> to vector<256x128xbf16>
    %c0_17 = arith.constant 0 : index
    %c0_18 = arith.constant 0 : index
    %c0_19 = arith.constant 0 : index
    %19 = vector.load %arg12[%c0_17, %c0_18, %c0_19] : memref<1x256x128xbf16, #tpu.memory_space<vmem>>, vector<1x256x128xbf16>
    %20 = vector.shape_cast %19 : vector<1x256x128xbf16> to vector<256x128xbf16>
    %21 = vector.shape_cast %18 : vector<256x128xbf16> to vector<1x256x128xbf16>
    tpu.vector_store %arg12[%c0_17, %c0_18, %c0_19], %21 {strides = array<i32>} : memref<1x256x128xbf16, #tpu.memory_space<vmem>>, vector<1x256x128xbf16>,
    %c0_20 = arith.constant 0 : index
    %c0_21 = arith.constant 0 : index
    %c0_22 = arith.constant 0 : index
    %22 = vector.load %arg4[%c0_20, %c0_21, %c0_22] : memref<1x256x128xbf16, #tpu.memory_space<vmem>>, vector<1x256x128xbf16>
    %23 = vector.shape_cast %22 : vector<1x256x128xbf16> to vector<256x128xbf16>
    %c0_23 = arith.constant 0 : index
    %c0_24 = arith.constant 0 : index
    %24 = vector.load %arg9[%c0_23, %c0_24] : memref<128x128xbf16, #tpu.memory_space<vmem>>, vector<128x128xbf16>
    %cst_25 = arith.constant dense<0.000000e+00> : vector<256x128xf32>
    %25 = tpu.matmul %23, %24, %cst_25 {dimension_numbers = #tpu.dot_dimension_numbers<[1], [0], [0], [1], [0, 0, 1, 1], [], []>} : vector<256x128xbf16>, vector<128x128xbf16>, vector<256x128xf32> -> vector<256x128xf32>
    %c0_26 = arith.constant 0 : index
    %c0_27 = arith.constant 0 : index
    %26 = vector.load %arg10[%c0_26, %c0_27] : memref<1x128xf32, #tpu.memory_space<vmem>>, vector<1x128xf32>
    %27 = vector.broadcast %26 : vector<1x128xf32> to vector<256x128xf32>
    %28 = arith.addf %25, %27 : vector<256x128xf32>
    %29 = arith.truncf %28 : vector<256x128xf32> to vector<256x128xbf16>
    %c0_28 = arith.constant 0 : index
    %c0_29 = arith.constant 0 : index
    %c0_30 = arith.constant 0 : index
    %30 = vector.load %arg13[%c0_28, %c0_29, %c0_30] : memref<1x256x128xbf16, #tpu.memory_space<vmem>>, vector<1x256x128xbf16>
    %31 = vector.shape_cast %30 : vector<1x256x128xbf16> to vector<256x128xbf16>
    %32 = vector.shape_cast %29 : vector<256x128xbf16> to vector<1x256x128xbf16>
    tpu.vector_store %arg13[%c0_28, %c0_29, %c0_30], %32 {strides = array<i32>} : memref<1x256x128xbf16, #tpu.memory_space<vmem>>, vector<1x256x128xbf16>,
    return
  }
  func.func @transform_0(%arg0: i32, %arg1: i32) -> (i32, i32, i32) {
    %c0_i32 = arith.constant 0 : i32
    %c0_i32_0 = arith.constant 0 : i32
    return %arg0, %arg1, %c0_i32 : i32, i32, i32
  }
  func.func @transform_1(%arg0: i32, %arg1: i32) -> (i32, i32, i32) {
    %c0_i32 = arith.constant 0 : i32
    %c0_i32_0 = arith.constant 0 : i32
    return %arg0, %arg1, %c0_i32 : i32, i32, i32
  }
  func.func @transform_2(%arg0: i32, %arg1: i32) -> (i32, i32, i32) {
    %c0_i32 = arith.constant 0 : i32
    %c0_i32_0 = arith.constant 0 : i32
    return %arg0, %arg1, %c0_i32 : i32, i32, i32
  }
  func.func @transform_3(%arg0: i32, %arg1: i32) -> (i32, i32) {
    %c0_i32 = arith.constant 0 : i32
    %c0_i32_0 = arith.constant 0 : i32
    %c0_i32_1 = arith.constant 0 : i32
    return %c0_i32, %c0_i32_0 : i32, i32
  }
  func.func @transform_4(%arg0: i32, %arg1: i32) -> (i32, i32) {
    %c0_i32 = arith.constant 0 : i32
    %c0_i32_0 = arith.constant 0 : i32
    %c0_i32_1 = arith.constant 0 : i32
    return %c0_i32, %c0_i32_0 : i32, i32
  }
  func.func @transform_5(%arg0: i32, %arg1: i32) -> (i32, i32) {
    %c0_i32 = arith.constant 0 : i32
    %c0_i32_0 = arith.constant 0 : i32
    %c0_i32_1 = arith.constant 0 : i32
    return %c0_i32, %c0_i32_0 : i32, i32
  }
  func.func @transform_6(%arg0: i32, %arg1: i32) -> (i32, i32) {
    %c0_i32 = arith.constant 0 : i32
    %c0_i32_0 = arith.constant 0 : i32
    %c0_i32_1 = arith.constant 0 : i32
    return %c0_i32, %c0_i32_0 : i32, i32
  }
  func.func @transform_7(%arg0: i32, %arg1: i32) -> (i32, i32) {
    %c0_i32 = arith.constant 0 : i32
    %c0_i32_0 = arith.constant 0 : i32
    %c0_i32_1 = arith.constant 0 : i32
    return %c0_i32, %c0_i32_0 : i32, i32
  }
  func.func @transform_8(%arg0: i32, %arg1: i32) -> (i32, i32) {
    %c0_i32 = arith.constant 0 : i32
    %c0_i32_0 = arith.constant 0 : i32
    %c0_i32_1 = arith.constant 0 : i32
    return %c0_i32, %c0_i32_0 : i32, i32
  }
  func.func @transform_9(%arg0: i32, %arg1: i32) -> (i32, i32, i32) {
    %c0_i32 = arith.constant 0 : i32
    %c0_i32_0 = arith.constant 0 : i32
    return %arg0, %arg1, %c0_i32 : i32, i32, i32
  }
  func.func @transform_10(%arg0: i32, %arg1: i32) -> (i32, i32, i32) {
    %c0_i32 = arith.constant 0 : i32
    %c0_i32_0 = arith.constant 0 : i32
    return %arg0, %arg1, %c0_i32 : i32, i32, i32
  }
  func.func @transform_11(%arg0: i32, %arg1: i32) -> (i32, i32, i32) {
    %c0_i32 = arith.constant 0 : i32
    %c0_i32_0 = arith.constant 0 : i32
    return %arg0, %arg1, %c0_i32 : i32, i32, i32
  }
}

</mosaic_0001>

<bundles_post_ra>
// kernel: tpu_custom_call.1
= control target key start
LH: loop header
LB: loop body
LE: loop exit
PB: predicated region body
PF: predicated region fallthrough
CT: control target
= control target key end

     0   :  { %s4545_s0 = inlined_call_operand.hbm [shape: bf16[2,256,128], index: 0, kind: input, shape index: {}]   ;;  %s4546_s1 = inlined_call_operand.hbm [shape: bf16[2,256,128], index: 1, kind: input, shape index: {}]   ;;  %s4547_s2 = inlined_call_operand.hbm [shape: bf16[2,256,128], index: 2, kind: input, shape index: {}]   ;;  %s4548_s3 = inlined_call_operand.hbm [shape: bf16[128,128], index: 3, kind: input, shape index: {}]   ;;  %s4549_s4 = inlined_call_operand.vmem [shape: f32[1,128], index: 4, kind: input, shape index: {}]   ;;  %s4550_s5 = inlined_call_operand.hbm [shape: bf16[128,128], index: 5, kind: input, shape index: {}]   ;;  %s4551_s6 = inlined_call_operand.vmem [shape: f32[1,128], index: 6, kind: input, shape index: {}]   ;;  %s4552_s7 = inlined_call_operand.hbm [shape: bf16[128,128], index: 7, kind: input, shape index: {}]   ;;  %s4553_s8 = inlined_call_operand.vmem [shape: f32[1,128], index: 8, kind: input, shape index: {}]   ;;  %s4554_s9 = inlined_call_operand.hbm [shape: bf16[2,256,128], index: 9, kind: output, shape index: {0}]   ;;  %s4555_s10 = inlined_call_operand.hbm [shape: bf16[2,256,128], index: 10, kind: output, shape index: {1}]   ;;  %s4556_s11 = inlined_call_operand.hbm [shape: bf16[2,256,128], index: 11, kind: output, shape index: {2}]  }
   0x1   :  { %4586 = sst [smem:[#allocation31_spill]] %s4546_s1 }
   0x2   :  { %4587 = sst [smem:[#allocation32_spill]] %s4548_s3 }
   0x3   :  { %4588 = sst [smem:[#allocation33_spill]] %s4551_s6 }
   0x4   :  { %4589 = sst [smem:[#allocation34_spill]] %s4553_s8 }
   0x5   :  { %4590 = sst [smem:[#allocation35_spill]] %s4554_s9 }
   0x6   :  { %4591 = sst [smem:[#allocation36_spill]] %s4555_s10 }
   0x7   :  { %4592 = sst [smem:[#allocation37_spill]] %s4556_s11 }
   0x8   :  { %17 = vsyncpa [#allocation3], 0 }
   0x9   :  { %19 = vsyncpa [#allocation3 + $0x1], 0 }
   0xa   :  { %20 = vsyncpa [#allocation6], 0 }
   0xb   :  { %22 = vsyncpa [#allocation6 + $0x1], 0 }
   0xc   :  { %23 = vsyncpa [#allocation9], 0 }
   0xd   :  { %24 = vsyncpa [#allocation12], 0 }
   0xe   :  { %25 = vsyncpa [#allocation4], 0 }
   0xf   :  { %27 = vsyncpa [#allocation4 + $0x1], 0 }
  0x10   :  { %28 = vsyncpa [#allocation15], 0 }
  0x11   :  { %30 = vsyncpa [#allocation15 + $0x1], 0  ;;  %s3854_s17 = smov 0   ;;  %s3856_s18 = smov 0  }
  0x12   :  { %s3858_s19 = smov 0   ;;  %s3860_s20 = smov 0  }
  0x13   :  { %s3862_s21 = smov 0   ;;  %s3864_s22 = smov 0  }
  0x14 LB: > { %4593 = sst [smem:[#allocation23_spill]] %s3759_s17  ;;  %s3885_s23 = sadd.s32 4294967295, %s3779_s22   ;;  %s3779_s22 = sphi %s3864_s22, %s36_s22   ;;  %s3775_s21 = sphi %s3862_s21, %s4643_s21   ;;  %s3771_s20 = sphi %s3860_s20, %s4642_s20   ;;  %s3767_s19 = sphi %s3858_s19, %s4646_s19   ;;  %s3763_s18 = sphi %s3856_s18, %s4645_s18   ;;  %s3759_s17 = sphi %s3854_s17, %s4644_s17  }
  0x15   : > { %4594 = sst [smem:[#allocation24_spill]] %s3771_s20  ;;  %s4557_s24 = sadd.s32 4294967294, %s3779_s22  }
  0x16   : > { %4595 = sst [smem:[#allocation25_spill]] %s3775_s21  ;;  %p64_p0 = scmp.ne.s32.totalorder %s3767_s19, %s3763_s18 }
  0x17   : > { %4596 = sst [smem:[#allocation26_spill]] %s3779_s22  ;;  %p65_p1 = scmp.eq.s32.totalorder %s3779_s22, 0 }
  0x18   : > { %p70_p2 = scmp.ne.s32.totalorder %s3763_s18, %s3759_s17  ;;  %p4562_p3 = scmp.eq.s32.totalorder %s3885_s23, 0 }
  0x19   : > { %p3894_p4 = por %p65_p1, %p64_p0  ;;  %p278_p5 = scmp.eq.s32.totalorder %s3885_s23, 1 }
  0x1a   : > { %p3901_p6 = por %p4562_p3, %p70_p2  ;;  %p284_p7 = scmp.eq.s32.totalorder %s4557_s24, 1 }
  0x1b   : > { %p3907_p8 = por %p278_p5, %p64_p0  ;;  %p2437_p9 = scmp.ge.s32.totalorder %s3779_s22, 1 }
  0x1c   : > { %s4598_s26 = scalar_select %p3901_p6, 1, 0 }
  0x1d   : > { %s4599_s27 = scalar_select %p3907_p8, 1, 0 }
  0x1e   : > { %p3912_p10 = por %p284_p7, %p70_p2  ;;  %p347_p11 = scmp.lt.s32.totalorder %s3779_s22, 3 }
  0x1f   : > { %4600 = sst [smem:[#allocation27_spill]] %s4599_s27  ;;  %s3781_s30 = smov [#allocation8]  }
  0x20   : > { %s4601_s28 = scalar_select %p3912_p10, 1, 0 }
  0x21   : > { %p3917_p12 = pnand %p2437_p9, %p347_p11  ;;  %s359_s12 = sshll.u32 %s3781_s30, 4  ;;  %s3921_s12 = int_to_ptr.vmem [resolvable:$true] %s359_s12 }
  0x22   : > { %4602 = sst [smem:[#allocation28_spill]] %s4601_s28  ;;  %s48_s14 = sadd.s32 1, %s3775_s21 }
  0x23   : > { %s4603_s29 = scalar_select %p3917_p12, 1, 0 }
  0x24   : > { %p3286_p13 = pneg %p3917_p12  ;;  %p3934_p2 = scmp.ge.s32.totalorder %s48_s14, 2 }
  0x25   : > { %s4606_s3 = sld [smem:[#allocation32_spill]] }
  0x26   : > { %p3928_p1 = pnand %p3286_p13, %p4562_p3 }
  0x28   : > { %s4604_s13 = scalar_select %p3928_p1, 1, 0 }
  0x29   : > { %p3946_p7 = pneg %p3928_p1 }
  0x2b   : > { %s3451_s30 = scalar_lea.hbm %s4606_s3, 1024 }
  0x2c   : > { %p3452_p5 = scmp.ne.s32.totalorder %s4606_s3, %s3451_s30  ;;  %p3458_p13 = scmp.lt.u32.totalorder %s3451_s30, %s4606_s3 }
  0x2d   : > { %s4607_s10 = scalar_select %p3946_p7, 1, 0 }
  0x2e   : > { %p3454_p9 = pnand %p3946_p7, %p3452_p5 }
  0x30   : > { %p3455_p11 = pneg %p3454_p9 }
  0x32   : > { %p3460_p0 = pnand %p3458_p13, %p3455_p11 }
  0x34   : > { %3463 = shalt.err (!%p3460_p0)
}
  0x35   : > { %s3464_s11 = scalar_lea.vmem %s3921_s12, 1024  ;;  %p3472_p6 = scmp.lt.s32.totalorder %s3921_s12, %s3921_s12 }
  0x36   : > { %p3465_p3 = scmp.ne.s32.totalorder %s3921_s12, %s3464_s11  ;;  %p3473_p12 = scmp.lt.s32.totalorder %s3464_s11, %s3464_s11 }
  0x38   : > { %p3467_p10 = pnand %p3465_p3, %p3946_p7  ;;  %p3474_p5 = por %p3473_p12, %p3472_p6 }
  0x3a   : > { %p3468_p8 = pneg %p3467_p10 }
  0x3c   : > { %p3475_p9 = pnand %p3474_p5, %p3468_p8 }
  0x3e   : > { %3478 = shalt.err (!%p3475_p9)
}
  0x3f   : > { %s4569_s17 = smov 64   ;;  %s4572_s6 = smov 4  }
  0x40   : > { %3289 = dma.hbm_to_vmem [thread:$0]  (!%p3928_p1), %s4606_s3, 1024, %s3921_s12, [#allocation9], %s4569_s17, %s4569_s17, %s4572_s6  }
  0x41   : > { %s4648_s14 = smov (%p3934_p2, %s48_s14), 0  ;;  %p3319_p3 = scmp.lt.s32.totalorder %s3779_s22, 2 }
  0x42   : > { %4608 = sst [smem:[#allocation29_spill]] %s4648_s14  ;;  %s4571_s15 = sand.u32 1, %s3767_s19  }
  0x43   : > { %s52_s30 = ssub.s32 %s3775_s21, %s4648_s14  ;;  %s3980_s11 = sshll.u32 %s4571_s15, 7 }
  0x44   : > { %p55_p6 = scmp.eq.s32.totalorder %s52_s30, 0  ;;  %s3983_s27 = sshll.u32 %s3775_s21, 11 }
  0x45   : > { %p3987_p8 = pnand %p3319_p3, %p3894_p4  ;;  %s431_s12 = sand.u32 1, %s3779_s22  }
  0x46   : > { %s4610_s16 = sadd.s32 1, %s3767_s19  ;;  %s4612_s1 = sld [smem:[#allocation31_spill]] }
  0x47   : > { %s4609_s9 = scalar_select %p3987_p8, 1, 0 }
  0x48   : > { %s3995_s24 = scalar_select %p55_p6, %s3767_s19, %s4610_s16  }
  0x49   : > { %s435_s25 = scalar_lea.vmem [#allocation5], %s3980_s11  ;;  %s3784_s6 = smov [#allocation10]  }
  0x4a   : > { %4611 = sst [smem:[#allocation30_spill]] %s3995_s24  ;;  %s444_s30 = sshll.u32 %s435_s25, 4  ;;  %s4004_s30 = int_to_ptr.vmem [resolvable:$true] %s444_s30 }
  0x4b   : > { %s4006_s3 = sshll.u32 %s3784_s6, 4  ;;  %s4008_s14 = scalar_lea.sflag [#allocation6], %s431_s12  ;;  %s376_s3 = int_to_ptr.vmem [resolvable:$true] %s4006_s3 }
  0x4c   : > { %s4001_s15 = scalar_lea.hbm %s4612_s1, %s3983_s27  ;;  %p4014_p10 = pneg %p3987_p8 }
  0x4d   : > { %s3479_s16 = scalar_lea.hbm %s4001_s15, 2048  ;;  %s3484_s21 = scalar_lea.hbm %s4612_s1, 4096 }
  0x4e   : > { %p3480_p4 = scmp.ne.s32.totalorder %s4001_s15, %s3479_s16  ;;  %p3485_p2 = scmp.lt.u32.totalorder %s4001_s15, %s4612_s1 }
  0x4f   : > { %s4613_s17 = scalar_select %p4014_p10, 1, 0 }
  0x50   : > { %p3482_p12 = pnand %p4014_p10, %p3480_p4  ;;  %p3486_p11 = scmp.lt.u32.totalorder %s3484_s21, %s3479_s16 }
  0x51   : > { %p3488_p5 = scmp.lt.u32.totalorder %s3479_s16, %s4001_s15 }
  0x52   : > { %p3483_p0 = pneg %p3482_p12  ;;  %p3487_p13 = por %p3486_p11, %p3485_p2 }
  0x54   : > { %p3489_p9 = por %p3488_p5, %p3487_p13 }
  0x56   : > { %p3490_p3 = pnand %p3489_p9, %p3483_p0 }
  0x58   : > { %3493 = shalt.err (!%p3490_p3)
}
  0x59   : > { %s3494_s12 = scalar_lea.vmem %s4004_s30, 2048  ;;  %s3785_s28 = smov [#allocation5]  }
  0x5a   : > { %p3495_p6 = scmp.ne.s32.totalorder %s4004_s30, %s3494_s12  ;;  %s3499_s25 = sshll.u32 %s3785_s28, 4  ;;  %s3500_s25 = int_to_ptr.vmem [resolvable:$false] %s3499_s25 }
  0x5b   : > { %s3501_s24 = scalar_lea.vmem %s3500_s25, 4096  ;;  %p3502_p1 = scmp.lt.s32.totalorder %s4004_s30, %s3500_s25 }
  0x5c   : > { %p3497_p4 = pnand %p3495_p6, %p4014_p10  ;;  %p3503_p7 = scmp.lt.s32.totalorder %s3501_s24, %s3494_s12 }
  0x5e   : > { %p3498_p12 = pneg %p3497_p4  ;;  %p3504_p2 = por %p3503_p7, %p3502_p1 }
  0x60   : > { %p3505_p11 = pnand %p3504_p2, %p3498_p12 }
  0x62   : > { %3508 = shalt.err (!%p3505_p11)
}
  0x63   : > { %s4614_s21 = smov 4   ;;  %s4615_s16 = smov 64  }
  0x64   : > { %3302 = dma.hbm_to_vmem [thread:$0]  (!%p3987_p8), %s4001_s15, 2048, %s4004_s30, %s4008_s14, %s4615_s16, %s4615_s16, %s4614_s21  }
  0x65   : > { %s3509_s25 = scalar_lea.hbm %s4550_s5, 1024  ;;  %p4616_p7 = scmp.ne.s32.totalorder %s4607_s10, 0 }
  0x66   : > { %p3510_p1 = scmp.ne.s32.totalorder %s4550_s5, %s3509_s25  ;;  %p3516_p5 = scmp.lt.u32.totalorder %s3509_s25, %s4550_s5 }
  0x68   : > { %p3512_p0 = pnand %p3510_p1, %p4616_p7 }
  0x6a   : > { %p3513_p13 = pneg %p3512_p0 }
  0x6c   : > { %p3518_p9 = pnand %p3516_p5, %p3513_p13 }
  0x6e   : > { %3521 = shalt.err (!%p3518_p9)
}
  0x6f   : > { %s3522_s8 = scalar_lea.vmem %s376_s3, 1024  ;;  %p3530_p12 = scmp.lt.s32.totalorder %s376_s3, %s376_s3 }
  0x70   : > { %p3523_p3 = scmp.ne.s32.totalorder %s376_s3, %s3522_s8  ;;  %p3531_p2 = scmp.lt.s32.totalorder %s3522_s8, %s3522_s8 }
  0x72   : > { %p3525_p6 = pnand %p3523_p3, %p4616_p7  ;;  %p3532_p11 = por %p3531_p2, %p3530_p12 }
  0x74   : > { %p3526_p4 = pneg %p3525_p6 }
  0x76   : > { %p3533_p8 = pnand %p3532_p11, %p3526_p4 }
  0x78   : > { %3536 = shalt.err (!%p3533_p8)
}
  0x79   : > { %p4617_p1 = scmp.ne.s32.totalorder %s4604_s13, 0  ;;  %s3786_s15 = smov [#allocation11]  }
  0x7a   : > { %s391_s30 = sshll.u32 %s3786_s15, 4  ;;  %s3537_s8 = scalar_lea.hbm %s4552_s7, 1024  ;;  %s392_s30 = int_to_ptr.vmem [resolvable:$true] %s391_s30 }
  0x7b   : > { %3292 = dma.hbm_to_vmem [thread:$0]  (!%p4617_p1), %s4550_s5, 1024, %s376_s3, [#allocation9], %s4615_s16, %s4615_s16, %s4614_s21  }
  0x7c   : > { %p3538_p8 = scmp.ne.s32.totalorder %s4552_s7, %s3537_s8  ;;  %p3544_p5 = scmp.lt.u32.totalorder %s3537_s8, %s4552_s7 }
  0x7e   : > { %p3540_p0 = pnand %p3538_p8, %p4616_p7 }
  0x80   : > { %p3541_p13 = pneg %p3540_p0 }
  0x82   : > { %p3546_p9 = pnand %p3544_p5, %p3541_p13 }
  0x84   : > { %3549 = shalt.err (!%p3546_p9)
}
  0x85   : > { %s3550_s3 = scalar_lea.vmem %s392_s30, 1024  ;;  %p3558_p12 = scmp.lt.s32.totalorder %s392_s30, %s392_s30 }
  0x86   : > { %p3551_p3 = scmp.ne.s32.totalorder %s392_s30, %s3550_s3  ;;  %p3559_p2 = scmp.lt.s32.totalorder %s3550_s3, %s3550_s3 }
  0x88   : > { %p3553_p6 = pnand %p3551_p3, %p4616_p7  ;;  %p3560_p11 = por %p3559_p2, %p3558_p12 }
  0x8a   : > { %p3554_p4 = pneg %p3553_p6 }
  0x8c   : > { %p3561_p10 = pnand %p3560_p11, %p3554_p4 }
  0x8e   : > { %3564 = shalt.err (!%p3561_p10)
}
  0x8f   : > { %3295 = dma.hbm_to_vmem [thread:$0]  (!%p4617_p1), %s4552_s7, 1024, %s392_s30, [#allocation12], %s4615_s16, %s4615_s16, %s4614_s21  }
  0x90   : > { %s4088_s15 = scalar_lea.hbm %s4545_s0, %s3983_s27  ;;  %s412_s13 = scalar_lea.vmem [#allocation2], %s3980_s11 }
  0x91   : > { %s421_s6 = sshll.u32 %s412_s13, 4  ;;  %s4618_s28 = sand.u32 1, %s3767_s19   ;;  %s4091_s6 = int_to_ptr.vmem [resolvable:$true] %s421_s6 }
  0x92   : > { %s4095_s8 = scalar_lea.sflag [#allocation3], %s4618_s28  ;;  %s3565_s25 = scalar_lea.hbm %s4088_s15, 2048 }
  0x93   : > { %p3566_p10 = scmp.ne.s32.totalorder %s4088_s15, %s3565_s25  ;;  %p4619_p7 = scmp.ne.s32.totalorder %s4613_s17, 0 }
  0x94   : > { %s3570_s24 = scalar_lea.hbm %s4545_s0, 4096  ;;  %p3571_p0 = scmp.lt.u32.totalorder %s4088_s15, %s4545_s0 }
  0x95   : > { %p3568_p1 = pnand %p3566_p10, %p4619_p7  ;;  %p3572_p13 = scmp.lt.u32.totalorder %s3570_s24, %s3565_s25 }
  0x96   : > { %p3574_p9 = scmp.lt.u32.totalorder %s3565_s25, %s4088_s15 }
  0x97   : > { %p3569_p8 = pneg %p3568_p1  ;;  %p3573_p5 = por %p3572_p13, %p3571_p0 }
  0x99   : > { %p3575_p3 = por %p3574_p9, %p3573_p5 }
  0x9b   : > { %p3576_p6 = pnand %p3575_p3, %p3569_p8 }
  0x9d   : > { %3579 = shalt.err (!%p3576_p6)
}
  0x9e   : > { %s3580_s1 = scalar_lea.vmem %s4091_s6, 2048  ;;  %s3787_s10 = smov [#allocation2]  }
  0x9f   : > { %p3581_p4 = scmp.ne.s32.totalorder %s4091_s6, %s3580_s1  ;;  %s3585_s22 = sshll.u32 %s3787_s10, 4  ;;  %s3586_s22 = int_to_ptr.vmem [resolvable:$false] %s3585_s22 }
  0xa0   : > { %s3587_s13 = scalar_lea.vmem %s3586_s22, 4096  ;;  %p3588_p11 = scmp.lt.s32.totalorder %s4091_s6, %s3586_s22 }
  0xa1   : > { %p3583_p12 = pnand %p3581_p4, %p4619_p7  ;;  %p3589_p10 = scmp.lt.s32.totalorder %s3587_s13, %s3580_s1 }
  0xa3   : > { %p3584_p2 = pneg %p3583_p12  ;;  %p3590_p1 = por %p3589_p10, %p3588_p11 }
  0xa5   : > { %p3591_p0 = pnand %p3590_p1, %p3584_p2 }
  0xa7   : > { %3594 = shalt.err (!%p3591_p0)
}
  0xa8   : > { %p4620_p8 = scmp.ne.s32.totalorder %s4609_s9, 0  ;;  %s4126_s30 = scalar_lea.hbm %s4547_s2, %s3983_s27 }
  0xa9   : > { %s458_s12 = scalar_lea.vmem [#allocation7], %s3980_s11  ;;  %s3595_s3 = scalar_lea.hbm %s4126_s30, 2048 }
  0xaa   : > { %3299 = dma.hbm_to_vmem [thread:$0]  (!%p4620_p8), %s4088_s15, 2048, %s4091_s6, %s4095_s8, %s4615_s16, %s4615_s16, %s4614_s21  }
  0xab   : > { %s467_s24 = sshll.u32 %s458_s12, 4  ;;  %p3596_p13 = scmp.ne.s32.totalorder %s4126_s30, %s3595_s3  ;;  %s4129_s24 = int_to_ptr.vmem [resolvable:$true] %s467_s24 }
  0xac   : > { %s3600_s6 = scalar_lea.hbm %s4547_s2, 4096  ;;  %p3601_p3 = scmp.lt.u32.totalorder %s4126_s30, %s4547_s2 }
  0xad   : > { %p3598_p5 = pnand %p3596_p13, %p4619_p7  ;;  %p3602_p6 = scmp.lt.u32.totalorder %s3600_s6, %s3595_s3 }
  0xae   : > { %p3604_p12 = scmp.lt.u32.totalorder %s3595_s3, %s4126_s30 }
  0xaf   : > { %p3599_p9 = pneg %p3598_p5  ;;  %p3603_p4 = por %p3602_p6, %p3601_p3 }
  0xb1   : > { %p3605_p2 = por %p3604_p12, %p3603_p4 }
  0xb3   : > { %p3606_p11 = pnand %p3605_p2, %p3599_p9 }
  0xb5   : > { %3609 = shalt.err (!%p3606_p11)
}
  0xb6   : > { %s3610_s11 = scalar_lea.vmem %s4129_s24, 2048  ;;  %s3788_s1 = smov [#allocation7]  }
  0xb7   : > { %p3611_p10 = scmp.ne.s32.totalorder %s4129_s24, %s3610_s11  ;;  %s3615_s10 = sshll.u32 %s3788_s1, 4  ;;  %s3616_s10 = int_to_ptr.vmem [resolvable:$false] %s3615_s10 }
  0xb8   : > { %s3617_s22 = scalar_lea.vmem %s3616_s10, 4096  ;;  %p3618_p13 = scmp.lt.s32.totalorder %s4129_s24, %s3616_s10 }
  0xb9   : > { %p3613_p1 = pnand %p3611_p10, %p4619_p7  ;;  %p3619_p5 = scmp.lt.s32.totalorder %s3617_s22, %s3610_s11 }
  0xbb   : > { %p3614_p0 = pneg %p3613_p1  ;;  %p3620_p3 = por %p3619_p5, %p3618_p13 }
  0xbd   : > { %p3621_p6 = pnand %p3620_p3, %p3614_p0 }
  0xbf   : > { %3624 = shalt.err (!%p3621_p6)
}
  0xc0   : > { %3305 = dma.hbm_to_vmem [thread:$0]  (!%p4620_p8), %s4126_s30, 2048, %s4129_s24, %s4008_s14, %s4615_s16, %s4615_s16, %s4614_s21  }
  0xc1   : > { %p4621_p7 = scmp.ne.s32.totalorder %s4603_s29, 0 }
  0xc2   : > { %s4159_s17 = sand.u32 (!%p4621_p7), 1, %s3763_s18   ;;  %p4622_p9 = scmp.ne.s32.totalorder (!%p4621_p7), %s4598_s26, 0 }
  0xc3   : > { %479 = sbr.rel (%p4621_p7) target bundleno = 589 (0x24d), region = 56  ;;  %s4162_s13 = sshll.u32 (!%p4621_p7), %s4159_s17, 7 }
  0xc4   : > { %s482_s9 = scalar_lea.sflag (!%p4621_p7), [#allocation3], %s4159_s17  ;;  %s4166_s28 = scalar_lea.vmem (!%p4621_p7), [#allocation2], %s4162_s13 }
  0xca   : > { %3734 = dma.done.wait (%p4622_p9), %s482_s9, 2048  }
  0xcb   : > { %3736 = vsyncadd (%p4622_p9), %s482_s9, 4294965248  ;;  %s490_s29 = sand.u32 1, %s3885_s23   ;;  %s4176_s21 = scalar_lea.vmem [#allocation5], %s4162_s13 }
  0xcc   : > { %s491_s14 = scalar_lea.sflag [#allocation6], %s490_s29 }
  0xcd   : > { %3738 = dma.done.wait (%p4622_p9), %s491_s14, 4096  }
  0xce   : > { %3740 = vsyncadd (%p4622_p9), %s491_s14, 4294963200  ;;  %s4183_s16 = scalar_lea.vmem [#allocation7], %s4162_s13  ;;  %p4623_p8 = scmp.eq.s32.totalorder %s3885_s23, 0 }
  0xd0   : > { %3742 = dma.done.wait (%p4623_p8), [#allocation9], 2048   ;;  %p4624_p4 = pmov %p4623_p8 }
  0xd2   : > { %3744 = vsyncadd (%p4624_p4), [#allocation9], 4294965248  ;;  %p4625_p12 = pmov %p4624_p4 }
  0xd3   : > { %p4626_p2 = pmov %p4624_p4 }
  0xd4   : > { %3746 = dma.done.wait (%p4625_p12), [#allocation12], 1024  }
  0xd5   : > { %3748 = vsyncadd (%p4626_p2), [#allocation12], 4294966272  ;;  %v3379_v0 = vld [vmem:[#allocation8] sm:$0xff]   ;;  %v3380_v1 = vld [vmem:[#allocation8 + $0x8] sm:$0xff]   ;;  %s4255_s30 = scalar_lea.vmem [#allocation13], %s4162_s13  ;;  %s4627_s12 = sld [smem:[#allocation24_spill]] }
  0xd6   : > { %3102 = vmatprep.subr.bf16.mxu0 %v3379_v0  ;;  %3246 = vmatprep.subr.bf16.mxu1 %v3379_v0  ;;  %v3381_v2 = vld [vmem:[#allocation8 + $0x10] sm:$0xff]   ;;  %v3382_v3 = vld [vmem:[#allocation8 + $0x18] sm:$0xff]   ;;  %v3387_v4 = vld [vmem:[%s4166_s28] sm:$0xff]   ;;  %s2167_s3 = sshll.u32 %s4255_s30, 4  ;;  %s4628_s6 = sld [smem:[#allocation34_spill]]  ;;  %s4308_s3 = int_to_ptr.vmem [resolvable:$true] %s2167_s3 }
  0xd7   : > { %3103 = vmatpush3.bf16.msra.mxu0 %v3379_v0  ;;  %3254 = vmatpush3.bf16.msra.mxu1 %v3379_v0  ;;  %v3388_v5 = vld [vmem:[%s4166_s28 + $0x40] sm:$0xff]   ;;  %v3384_v7 = vld [vmem:[#allocation8 + $0x28] sm:$0xff]   ;;  %v3385_v8 = vld [vmem:[#allocation8 + $0x30] sm:$0xff]   ;;  %s4629_s11 = sld [smem:[#allocation35_spill]]  ;;  %s4630_s1 = sld [smem:[#allocation27_spill]] }
  0xd8   : > { %3104 = vmatprep.subr.bf16.mxu0 %v3380_v1  ;;  %3247 = vmatprep.subr.bf16.mxu1 %v3380_v1  ;;  %v3383_v6 = vld [vmem:[#allocation8 + $0x20] sm:$0xff]   ;;  %v3386_v9 = vld [vmem:[#allocation8 + $0x38] sm:$0xff]   ;;  %v3389_v11 = vld [vmem:[%s4166_s28 + $0x8] sm:$0xff]   ;;  %s2142_s14 = scalar_lea.sflag [#allocation4], %s4159_s17 }
  0xd9   : > { %3118 = vmatprep.mubr.bf16.mxu0 %v3387_v4  ;;  %3134 = vmatprep.mubr.bf16.mxu1 %v3388_v5  ;;  %v3391_v10 = vld [vmem:[#allocation10] sm:$0xff]   ;;  %v3390_v13 = vld [vmem:[%s4166_s28 + $0x48] sm:$0xff]   ;;  %v3395_v16 = vld [vmem:[%s4166_s28 + $0x10] sm:$0xff]  }
  0xda   : > { %v3392_v12 = vld [vmem:[#allocation11] sm:$0xff]   ;;  %v3393_v14 = vld [vmem:[#allocation10 + $0x8] sm:$0xff]   ;;  %v3396_v17 = vld [vmem:[%s4166_s28 + $0x50] sm:$0xff]  }
  0xdb   : > { %3105 = vmatpush3.bf16.msra.mxu0 %v3380_v1  ;;  %3255 = vmatpush3.bf16.msra.mxu1 %v3380_v1  ;;  %v3394_v15 = vld [vmem:[#allocation11 + $0x8] sm:$0xff]   ;;  %v3399_v18 = vld [vmem:[#allocation10 + $0x10] sm:$0xff]   ;;  %v3397_v19 = vld [vmem:[%s4166_s28 + $0x18] sm:$0xff]   ;;  %s4290_s24 = sshll.u32 %s4627_s12, 11 }
  0xdc   : > { %3106 = vmatprep.subr.bf16.mxu0 %v3381_v2  ;;  %3248 = vmatprep.subr.bf16.mxu1 %v3381_v2  ;;  %v3400_v20 = vld [vmem:[#allocation11 + $0x10] sm:$0xff]   ;;  %v3398_v21 = vld [vmem:[%s4166_s28 + $0x58] sm:$0xff]   ;;  %v3403_v24 = vld [vmem:[%s4166_s28 + $0x20] sm:$0xff]  }
  0xdd   : > { %v3401_v22 = vld [vmem:[#allocation10 + $0x18] sm:$0xff]   ;;  %v3404_v25 = vld [vmem:[%s4166_s28 + $0x60] sm:$0xff]   ;;  %v3405_v27 = vld [vmem:[%s4166_s28 + $0x28] sm:$0xff]   ;;  %s4306_s10 = scalar_lea.hbm %s4629_s11, %s4290_s24  ;;  %p4632_p10 = scmp.ne.s32.totalorder %s4630_s1, 0 }
  0xde   : > { %v3402_v23 = vld [vmem:[#allocation11 + $0x18] sm:$0xff]   ;;  %v3407_v26 = vld [vmem:[#allocation10 + $0x20] sm:$0xff]   ;;  %v3406_v29 = vld [vmem:[%s4166_s28 + $0x68] sm:$0xff]  }
  0xdf   : > { %3107 = vmatpush3.bf16.msra.mxu0 %v3381_v2  ;;  %3256 = vmatpush3.bf16.msra.mxu1 %v3381_v2  ;;  %v3408_v28 = vld [vmem:[#allocation11 + $0x20] sm:$0xff]   ;;  %v3409_v30 = vld [vmem:[#allocation10 + $0x28] sm:$0xff]   ;;  %v3411_v32 = vld [vmem:[%s4166_s28 + $0x30] sm:$0xff]  }
  0xe0   : > { %3108 = vmatprep.subr.bf16.mxu0 %v3382_v3  ;;  %3249 = vmatprep.subr.bf16.mxu1 %v3382_v3  ;;  %v3410_v31 = vld [vmem:[#allocation11 + $0x28] sm:$0xff]   ;;  %v3412_v33 = vld [vmem:[%s4166_s28 + $0x70] sm:$0xff]   ;;  %v3413_v35 = vld [vmem:[%s4166_s28 + $0x38] sm:$0xff]  }
  0xe1   : > { %v3415_v34 = vld [vmem:[#allocation10 + $0x30] sm:$0xff]   ;;  %v3414_v37 = vld [vmem:[%s4166_s28 + $0x78] sm:$0xff]   ;;  %v3419_v40 = vld [vmem:[%s4176_s21] sm:$0xff]   ;;  %s4631_s28 = sld [smem:[#allocation33_spill]] }
  0xe2   : > { %v3416_v36 = vld [vmem:[#allocation11 + $0x30] sm:$0xff]   ;;  %v3417_v38 = vld [vmem:[#allocation10 + $0x38] sm:$0xff]   ;;  %v3420_v41 = vld [vmem:[%s4183_s16] sm:$0xff]  }
  0xe3   : > { %3109 = vmatpush3.bf16.msra.mxu0 %v3382_v3  ;;  %3257 = vmatpush3.bf16.msra.mxu1 %v3382_v3  ;;  %v3418_v39 = vld [vmem:[#allocation11 + $0x38] sm:$0xff]   ;;  %v3421_v42 = vld [vmem:[%s4176_s21 + $0x8] sm:$0xff]   ;;  %v3423_v44 = vld [vmem:[%s4176_s21 + $0x10] sm:$0xff]  }
  0xe4   : > { %3110 = vmatprep.subr.bf16.mxu0 %v3383_v6  ;;  %3250 = vmatprep.subr.bf16.mxu1 %v3383_v6  ;;  %v3422_v43 = vld [vmem:[%s4183_s16 + $0x8] sm:$0xff]   ;;  %v3424_v45 = vld [vmem:[%s4183_s16 + $0x10] sm:$0xff]   ;;  %v3425_v46 = vld [vmem:[%s4176_s21 + $0x18] sm:$0xff]  }
  0xe5   : > { %v3426_v47 = vld [vmem:[%s4183_s16 + $0x18] sm:$0xff]   ;;  %v3427_v48 = vld [vmem:[%s4176_s21 + $0x20] sm:$0xff]   ;;  %v3429_v50 = vld [vmem:[%s4176_s21 + $0x28] sm:$0xff]  }
  0xe6   : > { %v3428_v49 = vld [vmem:[%s4183_s16 + $0x20] sm:$0xff]   ;;  %v3430_v51 = vld [vmem:[%s4183_s16 + $0x28] sm:$0xff]   ;;  %v3431_v52 = vld [vmem:[%s4176_s21 + $0x30] sm:$0xff]  }
  0xe7   : > { %3111 = vmatpush3.bf16.msra.mxu0 %v3383_v6  ;;  %3258 = vmatpush3.bf16.msra.mxu1 %v3383_v6  ;;  %v3432_v53 = vld [vmem:[%s4183_s16 + $0x30] sm:$0xff]   ;;  %v3433_v54 = vld [vmem:[%s4176_s21 + $0x38] sm:$0xff]   ;;  %v3435_v56 = vld [vmem:[%s4176_s21 + $0x40] sm:$0xff]  }
  0xe8   : > { %3112 = vmatprep.subr.bf16.mxu0 %v3384_v7  ;;  %3251 = vmatprep.subr.bf16.mxu1 %v3384_v7  ;;  %v3434_v55 = vld [vmem:[%s4183_s16 + $0x38] sm:$0xff]   ;;  %v3436_v57 = vld [vmem:[%s4183_s16 + $0x40] sm:$0xff]   ;;  %v3437_v58 = vld [vmem:[%s4176_s21 + $0x48] sm:$0xff]  }
  0xe9   : > { %v3438_v59 = vld [vmem:[%s4183_s16 + $0x48] sm:$0xff]   ;;  %v3439_v60 = vld [vmem:[%s4176_s21 + $0x50] sm:$0xff]   ;;  %v3441_v62 = vld [vmem:[%s4176_s21 + $0x58] sm:$0xff]  }
  0xea   : > { %v3440_v61 = vld [vmem:[%s4183_s16 + $0x50] sm:$0xff]   ;;  %v3442_v63 = vld [vmem:[%s4183_s16 + $0x58] sm:$0xff]   ;;  %v3443_v0 = vld [vmem:[%s4176_s21 + $0x60] sm:$0xff]  }
  0xeb   : > { %3113 = vmatpush3.bf16.msra.mxu0 %v3384_v7  ;;  %3259 = vmatpush3.bf16.msra.mxu1 %v3384_v7  ;;  %v3444_v1 = vld [vmem:[%s4183_s16 + $0x60] sm:$0xff]   ;;  %v3445_v2 = vld [vmem:[%s4176_s21 + $0x68] sm:$0xff]   ;;  %v3447_v4 = vld [vmem:[%s4176_s21 + $0x70] sm:$0xff]  }
  0xec   : > { %3114 = vmatprep.subr.bf16.mxu0 %v3385_v8  ;;  %3252 = vmatprep.subr.bf16.mxu1 %v3385_v8  ;;  %v3446_v3 = vld [vmem:[%s4183_s16 + $0x68] sm:$0xff]   ;;  %v3448_v5 = vld [vmem:[%s4183_s16 + $0x70] sm:$0xff]   ;;  %v3449_v6 = vld [vmem:[%s4176_s21 + $0x78] sm:$0xff]   ;;  %s3625_s21 = scalar_lea.vmem %s4308_s3, 2048 }
  0xed   : > { %v3450_v7 = vld [vmem:[%s4183_s16 + $0x78] sm:$0xff]   ;;  %p3626_p11 = scmp.ne.s32.totalorder %s4308_s3, %s3625_s21  ;;  %s3789_s16 = smov [#allocation13]  }
  0xee   : > { %s3629_s26 = sshll.u32 %s3789_s16, 4  ;;  %s3630_s26 = int_to_ptr.vmem [resolvable:$false] %s3629_s26 }
  0xef   : > { %3115 = vmatpush3.bf16.msra.mxu0 %v3385_v8  ;;  %3260 = vmatpush3.bf16.msra.mxu1 %v3385_v8  ;;  %v4244_v8 = vld [vmem:[%s4549_s4] ss:$0 sm:$0xff]  ;;  %p3627_p1 = pnand %p3626_p11, %p4632_p10  ;;  %s3631_s25 = scalar_lea.vmem %s3630_s26, 4096 }
  0xf0   : > { %3116 = vmatprep.subr.bf16.mxu0 %v3386_v9  ;;  %3253 = vmatprep.subr.bf16.mxu1 %v3386_v9  ;;  %p3632_p13 = scmp.lt.s32.totalorder %s4308_s3, %s3630_s26  ;;  %p3633_p5 = scmp.lt.s32.totalorder %s3631_s25, %s3625_s21 }
  0xf1   : > { %p3628_p0 = pneg %p3627_p1 }
  0xf2   : > { %p3634_p3 = por %p3633_p5, %p3632_p13 }
  0xf3   : > { %3117 = vmatpush3.bf16.msra.mxu0 %v3386_v9  ;;  %3261 = vmatpush3.bf16.msra.mxu1 %v3386_v9 }
  0xf4   : > { %3150 = vmatprep.subr.bf16.mxu1 %v3391_v10  ;;  %3198 = vmatprep.subr.bf16.mxu0 %v3392_v12  ;;  %p3635_p6 = pnand %p3634_p3, %p3628_p0 }
  0xf6   : > { %3119 = vmatmul.mubr.bf16.vlgmr.msra.gmra.mrb[0].mxu0 %v3389_v11  ;;  %3135 = vmatmul.mubr.bf16.vlgmr.msra.gmra.mrb[0].mxu1 %v3390_v13 }
  0xf7   : > { %3151 = vmatpush3.bf16.msra.mxu1 %v3391_v10  ;;  %3199 = vmatpush3.bf16.msra.mxu0 %v3392_v12 }
  0xf8   : > { %3152 = vmatprep.subr.bf16.mxu1 %v3393_v14  ;;  %3200 = vmatprep.subr.bf16.mxu0 %v3394_v15 }
  0xf9   : > { %3122 = vmatprep.mubr.bf16.mxu0 %v3395_v16  ;;  %3138 = vmatprep.mubr.bf16.mxu1 %v3396_v17 }
  0xfb   : > { %3153 = vmatpush3.bf16.msra.mxu1 %v3393_v14  ;;  %3201 = vmatpush3.bf16.msra.mxu0 %v3394_v15 }
  0xfc   : > { %3154 = vmatprep.subr.bf16.mxu1 %v3399_v18  ;;  %3202 = vmatprep.subr.bf16.mxu0 %v3400_v20 }
  0xfe   : > { %3123 = vmatmul.mubr.bf16.gmra.mrb[4].mxu0 %v3397_v19  ;;  %3139 = vmatmul.mubr.bf16.gmra.mrb[4].mxu1 %v3398_v21 }
  0xff   : > { %3155 = vmatpush3.bf16.msra.mxu1 %v3399_v18  ;;  %3203 = vmatpush3.bf16.msra.mxu0 %v3400_v20 }
 0x100   : > { %3156 = vmatprep.subr.bf16.mxu1 %v3401_v22  ;;  %3204 = vmatprep.subr.bf16.mxu0 %v3402_v23 }
 0x101   : > { %3126 = vmatprep.mubr.bf16.mxu0 %v3403_v24  ;;  %3142 = vmatprep.mubr.bf16.mxu1 %v3404_v25 }
 0x103   : > { %3157 = vmatpush3.bf16.msra.mxu1 %v3401_v22  ;;  %3205 = vmatpush3.bf16.msra.mxu0 %v3402_v23 }
 0x104   : > { %3158 = vmatprep.subr.bf16.mxu1 %v3407_v26  ;;  %3206 = vmatprep.subr.bf16.mxu0 %v3408_v28 }
 0x106   : > { %3127 = vmatmul.mubr.bf16.gmra.mrb[8].mxu0 %v3405_v27  ;;  %3143 = vmatmul.mubr.bf16.gmra.mrb[8].mxu1 %v3406_v29 }
 0x107   : > { %3159 = vmatpush3.bf16.msra.mxu1 %v3407_v26  ;;  %3207 = vmatpush3.bf16.msra.mxu0 %v3408_v28 }
 0x108   : > { %3160 = vmatprep.subr.bf16.mxu1 %v3409_v30  ;;  %3208 = vmatprep.subr.bf16.mxu0 %v3410_v31 }
 0x109   : > { %3130 = vmatprep.mubr.bf16.mxu0 %v3411_v32  ;;  %3146 = vmatprep.mubr.bf16.mxu1 %v3412_v33 }
 0x10b   : > { %3161 = vmatpush3.bf16.msra.mxu1 %v3409_v30  ;;  %3209 = vmatpush3.bf16.msra.mxu0 %v3410_v31 }
 0x10c   : > { %3162 = vmatprep.subr.bf16.mxu1 %v3415_v34  ;;  %3210 = vmatprep.subr.bf16.mxu0 %v3416_v36 }
 0x10e   : > { %3131 = vmatmul.mubr.bf16.gmra.mrb[12].mxu0 %v3413_v35  ;;  %3147 = vmatmul.mubr.bf16.gmra.mrb[12].mxu1 %v3414_v37 }
 0x10f   : > { %3163 = vmatpush3.bf16.msra.mxu1 %v3415_v34  ;;  %3211 = vmatpush3.bf16.msra.mxu0 %v3416_v36 }
 0x110   : > { %3164 = vmatprep.subr.bf16.mxu1 %v3417_v38  ;;  %3212 = vmatprep.subr.bf16.mxu0 %v3418_v39 }
 0x111   : > { %3166 = vmatprep.mubr.bf16.mxu1 %v3419_v40  ;;  %3214 = vmatprep.mubr.bf16.mxu0 %v3420_v41 }
 0x113   : > { %3165 = vmatpush3.bf16.msra.mxu1 %v3417_v38  ;;  %3213 = vmatpush3.bf16.msra.mxu0 %v3418_v39 }
 0x116   : > { %3167 = vmatmul.mubr.bf16.vlgmr.msra.gmra.mrb[16].mxu1 %v3421_v42  ;;  %3215 = vmatmul.mubr.bf16.vlgmr.msra.gmra.mrb[16].mxu0 %v3422_v43 }
 0x117   : > { %3170 = vmatprep.mubr.bf16.mxu1 %v3423_v44  ;;  %3218 = vmatprep.mubr.bf16.mxu0 %v3424_v45 }
 0x11e   : > { %3171 = vmatmul.mubr.bf16.gmra.mrb[20].mxu1 %v3425_v46  ;;  %3219 = vmatmul.mubr.bf16.gmra.mrb[20].mxu0 %v3426_v47 }
 0x11f   : > { %3174 = vmatprep.mubr.bf16.mxu1 %v3427_v48  ;;  %3222 = vmatprep.mubr.bf16.mxu0 %v3428_v49 }
 0x126   : > { %3175 = vmatmul.mubr.bf16.gmra.mrb[24].mxu1 %v3429_v50  ;;  %3223 = vmatmul.mubr.bf16.gmra.mrb[24].mxu0 %v3430_v51 }
 0x127   : > { %3178 = vmatprep.mubr.bf16.mxu1 %v3431_v52  ;;  %3226 = vmatprep.mubr.bf16.mxu0 %v3432_v53 }
 0x12e   : > { %3179 = vmatmul.mubr.bf16.gmra.mrb[28].mxu1 %v3433_v54  ;;  %3227 = vmatmul.mubr.bf16.gmra.mrb[28].mxu0 %v3434_v55 }
 0x12f   : > { %3182 = vmatprep.mubr.bf16.mxu1 %v3435_v56  ;;  %3230 = vmatprep.mubr.bf16.mxu0 %v3436_v57 }
 0x136   : > { %3183 = vmatmul.mubr.bf16.gmra.mrb[32].mxu1 %v3437_v58  ;;  %3231 = vmatmul.mubr.bf16.gmra.mrb[32].mxu0 %v3438_v59 }
 0x137   : > { %3186 = vmatprep.mubr.bf16.mxu1 %v3439_v60  ;;  %3234 = vmatprep.mubr.bf16.mxu0 %v3440_v61 }
 0x13e   : > { %3187 = vmatmul.mubr.bf16.gmra.mrb[36].mxu1 %v3441_v62  ;;  %3235 = vmatmul.mubr.bf16.gmra.mrb[36].mxu0 %v3442_v63 }
 0x13f   : > { %3190 = vmatprep.mubr.bf16.mxu1 %v3443_v0  ;;  %3238 = vmatprep.mubr.bf16.mxu0 %v3444_v1 }
 0x146   : > { %3191 = vmatmul.mubr.bf16.gmra.mrb[40].mxu1 %v3445_v2  ;;  %3239 = vmatmul.mubr.bf16.gmra.mrb[40].mxu0 %v3446_v3 }
 0x147   : > { %3194 = vmatprep.mubr.bf16.mxu1 %v3447_v4  ;;  %3242 = vmatprep.mubr.bf16.mxu0 %v3448_v5 }
 0x14e   : > { %3195 = vmatmul.mubr.bf16.gmra.mrb[44].mxu1 %v3449_v6  ;;  %3243 = vmatmul.mubr.bf16.gmra.mrb[44].mxu0 %v3450_v7 }
 0x1c9   : > { %v3120_v9 = vpop.f32.mrb[0].mxu0  ;;  %v3136_v10 = vpop.f32.mrb[0].mxu1 }
 0x1ca   : > { %v823_v11 = vadd.f32 %v3120_v9, %v4244_v8  ;;  %v814_v12 = vpop.f32.mrb[1].mxu0  ;;  %v878_v13 = vpop.f32.mrb[1].mxu1  ;;  %v887_v16 = vadd.f32 %v3136_v10, %v4244_v8 }
 0x1cb   : > { %v3121_v14 = vpop.f32.mrb[2].mxu0  ;;  %v3137_v15 = vpop.f32.mrb[2].mxu1  ;;  %v815_v21 = vadd.f32 %v4244_v8, %v814_v12  ;;  %v879_v22 = vadd.f32 %v4244_v8, %v878_v13 }
 0x1cc   : > { %v826_v17 = vadd.f32 %v3121_v14, %v4244_v8  ;;  %v890_v18 = vadd.f32 %v3137_v15, %v4244_v8  ;;  %v817_v19 = vpop.f32.mrb[3].mxu0  ;;  %v881_v20 = vpop.f32.mrb[3].mxu1 }
 0x1cd   : > { %v818_v23 = vadd.f32 %v4244_v8, %v817_v19  ;;  %v882_v24 = vadd.f32 %v4244_v8, %v881_v20 }
 0x1ce   : > { %v2753_v25 = vpack.c.bf16 %v826_v17, %v823_v11  ;;  %v2793_v26 = vpack.c.bf16 %v890_v18, %v887_v16 }
 0x1cf   : > { %v2748_v27 = vpack.c.bf16 %v818_v23, %v815_v21  ;;  %v2788_v28 = vpack.c.bf16 %v882_v24, %v879_v22 }
 0x1d0   : > { %2985 = vst [vmem:[%s4255_s30 + $0x8] sm:$0xff] %v2753_v25   ;;  %2993 = vst [vmem:[%s4255_s30 + $0x48] sm:$0xff] %v2793_v26   ;;  %v4300_v26 = vld [vmem:[%s4628_s6] ss:$0 sm:$0xff] }
 0x1d1   : > { %2749 = vst [vmem:[%s4255_s30] sm:$0xff] %v2748_v27   ;;  %2992 = vst [vmem:[%s4255_s30 + $0x40] sm:$0xff] %v2788_v28   ;;  %v3124_v29 = vpop.f32.mrb[4].mxu0  ;;  %v3140_v30 = vpop.f32.mrb[4].mxu1  ;;  %v4317_v27 = vld [vmem:[%s4631_s28] ss:$0 sm:$0xff] }
 0x1d2   : > { %v839_v31 = vadd.f32 %v3124_v29, %v4244_v8  ;;  %v830_v32 = vpop.f32.mrb[5].mxu0  ;;  %v894_v33 = vpop.f32.mrb[5].mxu1  ;;  %v903_v36 = vadd.f32 %v3140_v30, %v4244_v8 }
 0x1d3   : > { %v3125_v34 = vpop.f32.mrb[6].mxu0  ;;  %v3141_v35 = vpop.f32.mrb[6].mxu1  ;;  %v831_v41 = vadd.f32 %v4244_v8, %v830_v32  ;;  %v895_v42 = vadd.f32 %v4244_v8, %v894_v33 }
 0x1d4   : > { %v842_v37 = vadd.f32 %v3125_v34, %v4244_v8  ;;  %v906_v38 = vadd.f32 %v3141_v35, %v4244_v8  ;;  %v833_v39 = vpop.f32.mrb[7].mxu0  ;;  %v897_v40 = vpop.f32.mrb[7].mxu1 }
 0x1d5   : > { %v834_v43 = vadd.f32 %v4244_v8, %v833_v39  ;;  %v898_v44 = vadd.f32 %v4244_v8, %v897_v40 }
 0x1d6   : > { %v2763_v45 = vpack.c.bf16 %v842_v37, %v839_v31  ;;  %v2803_v46 = vpack.c.bf16 %v906_v38, %v903_v36 }
 0x1d7   : > { %v2758_v47 = vpack.c.bf16 %v834_v43, %v831_v41  ;;  %v2798_v48 = vpack.c.bf16 %v898_v44, %v895_v42 }
 0x1d8   : > { %2987 = vst [vmem:[%s4255_s30 + $0x18] sm:$0xff] %v2763_v45   ;;  %2995 = vst [vmem:[%s4255_s30 + $0x58] sm:$0xff] %v2803_v46  }
 0x1d9   : > { %2986 = vst [vmem:[%s4255_s30 + $0x10] sm:$0xff] %v2758_v47   ;;  %2994 = vst [vmem:[%s4255_s30 + $0x50] sm:$0xff] %v2798_v48   ;;  %v3128_v49 = vpop.f32.mrb[8].mxu0  ;;  %v3144_v50 = vpop.f32.mrb[8].mxu1 }
 0x1da   : > { %v855_v51 = vadd.f32 %v3128_v49, %v4244_v8  ;;  %v846_v52 = vpop.f32.mrb[9].mxu0  ;;  %v910_v53 = vpop.f32.mrb[9].mxu1  ;;  %v919_v56 = vadd.f32 %v3144_v50, %v4244_v8 }
 0x1db   : > { %v3129_v54 = vpop.f32.mrb[10].mxu0  ;;  %v3145_v55 = vpop.f32.mrb[10].mxu1  ;;  %v847_v61 = vadd.f32 %v4244_v8, %v846_v52  ;;  %v911_v62 = vadd.f32 %v4244_v8, %v910_v53 }
 0x1dc   : > { %v858_v57 = vadd.f32 %v3129_v54, %v4244_v8  ;;  %v922_v58 = vadd.f32 %v3145_v55, %v4244_v8  ;;  %v849_v59 = vpop.f32.mrb[11].mxu0  ;;  %v913_v60 = vpop.f32.mrb[11].mxu1 }
 0x1dd   : > { %v850_v63 = vadd.f32 %v4244_v8, %v849_v59  ;;  %v914_v0 = vadd.f32 %v4244_v8, %v913_v60 }
 0x1de   : > { %v2773_v1 = vpack.c.bf16 %v858_v57, %v855_v51  ;;  %v2813_v2 = vpack.c.bf16 %v922_v58, %v919_v56 }
 0x1df   : > { %v2768_v3 = vpack.c.bf16 %v850_v63, %v847_v61  ;;  %v2808_v4 = vpack.c.bf16 %v914_v0, %v911_v62 }
 0x1e0   : > { %2989 = vst [vmem:[%s4255_s30 + $0x28] sm:$0xff] %v2773_v1   ;;  %2997 = vst [vmem:[%s4255_s30 + $0x68] sm:$0xff] %v2813_v2  }
 0x1e1   : > { %2988 = vst [vmem:[%s4255_s30 + $0x20] sm:$0xff] %v2768_v3   ;;  %2996 = vst [vmem:[%s4255_s30 + $0x60] sm:$0xff] %v2808_v4   ;;  %v3132_v5 = vpop.f32.mrb[12].mxu0  ;;  %v3148_v6 = vpop.f32.mrb[12].mxu1 }
 0x1e2   : > { %v871_v7 = vadd.f32 %v3132_v5, %v4244_v8  ;;  %v862_v9 = vpop.f32.mrb[13].mxu0  ;;  %v926_v10 = vpop.f32.mrb[13].mxu1  ;;  %v935_v13 = vadd.f32 %v3148_v6, %v4244_v8 }
 0x1e3   : > { %v3133_v11 = vpop.f32.mrb[14].mxu0  ;;  %v3149_v12 = vpop.f32.mrb[14].mxu1  ;;  %v863_v18 = vadd.f32 %v4244_v8, %v862_v9  ;;  %v927_v19 = vadd.f32 %v4244_v8, %v926_v10 }
 0x1e4   : > { %v874_v14 = vadd.f32 %v3133_v11, %v4244_v8  ;;  %v938_v15 = vadd.f32 %v3149_v12, %v4244_v8  ;;  %v865_v16 = vpop.f32.mrb[15].mxu0  ;;  %v929_v17 = vpop.f32.mrb[15].mxu1 }
 0x1e5   : > { %v866_v20 = vadd.f32 %v4244_v8, %v865_v16  ;;  %v930_v21 = vadd.f32 %v4244_v8, %v929_v17 }
 0x1e6   : > { %v2783_v22 = vpack.c.bf16 %v874_v14, %v871_v7  ;;  %v2823_v23 = vpack.c.bf16 %v938_v15, %v935_v13 }
 0x1e7   : > { %v2778_v24 = vpack.c.bf16 %v866_v20, %v863_v18  ;;  %v2818_v25 = vpack.c.bf16 %v930_v21, %v927_v19 }
 0x1e8   : > { %2991 = vst [vmem:[%s4255_s30 + $0x38] sm:$0xff] %v2783_v22   ;;  %2999 = vst [vmem:[%s4255_s30 + $0x78] sm:$0xff] %v2823_v23  }
 0x1e9   : > { %2990 = vst [vmem:[%s4255_s30 + $0x30] sm:$0xff] %v2778_v24   ;;  %2998 = vst [vmem:[%s4255_s30 + $0x70] sm:$0xff] %v2818_v25   ;;  %v3168_v8 = vpop.f32.mrb[16].mxu1  ;;  %v3216_v28 = vpop.f32.mrb[16].mxu0 }
 0x1ea   : > { %v1863_v29 = vadd.f32 %v3216_v28, %v4300_v26  ;;  %v1334_v30 = vpop.f32.mrb[17].mxu1  ;;  %v1854_v31 = vpop.f32.mrb[17].mxu0 }
 0x1eb   : > { %3638 = shalt.err (!%p3635_p6)
}
 0x1ec   : > { %s3639_s30 = scalar_lea.hbm %s4306_s10, 2048  ;;  %s3643_s15 = scalar_lea.hbm %s4629_s11, 4096 }
 0x1ed   : > { %p3640_p7 = scmp.ne.s32.totalorder %s4306_s10, %s3639_s30  ;;  %p3644_p4 = scmp.lt.u32.totalorder %s4306_s10, %s4629_s11 }
 0x1ee   : > { %p3645_p12 = scmp.lt.u32.totalorder %s3643_s15, %s3639_s30  ;;  %p3647_p11 = scmp.lt.u32.totalorder %s3639_s30, %s4306_s10 }
 0x1ef   : > { %p3641_p9 = pnand %p3640_p7, %p4632_p10 }
 0x1f0   : > { %p3646_p2 = por %p3645_p12, %p3644_p4 }
 0x1f1   : > { %p3642_p8 = pneg %p3641_p9 }
 0x1f2   : > { %p3648_p1 = por %p3647_p11, %p3646_p2 }
 0x1f4   : > { %p3649_p0 = pnand %p3648_p1, %p3642_p8 }
 0x1f6   : > { %3652 = shalt.err (!%p3649_p0)
}
 0x1f7   : > { %s3790_s27 = smov 64   ;;  %s3791_s22 = smov 4   ;;  %v3169_v32 = vpop.f32.mrb[18].mxu1  ;;  %v3217_v33 = vpop.f32.mrb[18].mxu0  ;;  %v1343_v34 = vadd.f32 %v3168_v8, %v4317_v27  ;;  %v1335_v39 = vadd.f32 %v4317_v27, %v1334_v30  ;;  %v1855_v40 = vadd.f32 %v4300_v26, %v1854_v31 }
 0x1f8   : > { %3280 = dma.vmem_to_hbm [thread:$0]  (%p4632_p10), %s4308_s3, 2048, %s4306_s10, %s2142_s14, %s3790_s27, %s3790_s27, %s3791_s22   ;;  %v1346_v35 = vadd.f32 %v3169_v32, %v4317_v27  ;;  %v1866_v36 = vadd.f32 %v3217_v33, %v4300_v26  ;;  %v1337_v37 = vpop.f32.mrb[19].mxu1  ;;  %v1857_v38 = vpop.f32.mrb[19].mxu0 }
 0x1f9   : > { %v1338_v41 = vadd.f32 %v4317_v27, %v1337_v37  ;;  %v1858_v42 = vadd.f32 %v4300_v26, %v1857_v38  ;;  %s4355_s17 = scalar_lea.vmem [#allocation14], %s4162_s13  ;;  %s4359_s3 = scalar_lea.vmem [#allocation16], %s4162_s13  ;;  %v3172_v47 = vpop.f32.mrb[20].mxu1  ;;  %v3220_v48 = vpop.f32.mrb[20].mxu0 }
 0x1fa   : > { %v2833_v43 = vpack.c.bf16 %v1346_v35, %v1343_v34  ;;  %v2913_v44 = vpack.c.bf16 %v1866_v36, %v1863_v29  ;;  %v1879_v49 = vadd.f32 %v3220_v48, %v4300_v26  ;;  %v1350_v50 = vpop.f32.mrb[21].mxu1  ;;  %v1870_v51 = vpop.f32.mrb[21].mxu0  ;;  %v1359_v54 = vadd.f32 %v3172_v47, %v4317_v27  ;;  %s2185_s13 = sshll.u32 %s4355_s17, 4  ;;  %s2203_s10 = sshll.u32 %s4359_s3, 4  ;;  %s4452_s13 = int_to_ptr.vmem [resolvable:$true] %s2185_s13  ;;  %s4462_s10 = int_to_ptr.vmem [resolvable:$true] %s2203_s10 }
 0x1fb   : > { %v2828_v45 = vpack.c.bf16 %v1338_v41, %v1335_v39  ;;  %v2908_v46 = vpack.c.bf16 %v1858_v42, %v1855_v40  ;;  %v3173_v52 = vpop.f32.mrb[22].mxu1  ;;  %v3221_v53 = vpop.f32.mrb[22].mxu0  ;;  %v1351_v59 = vadd.f32 %v4317_v27, %v1350_v50  ;;  %v1871_v60 = vadd.f32 %v4300_v26, %v1870_v51  ;;  %s4633_s14 = sld [smem:[#allocation36_spill]]  ;;  %s4634_s25 = sld [smem:[#allocation37_spill]] }
 0x1fc   : > { %3000 = vst [vmem:[%s4355_s17 + $0x8] sm:$0xff] %v2833_v43   ;;  %3015 = vst [vmem:[%s4359_s3 + $0x8] sm:$0xff] %v2913_v44   ;;  %v1362_v55 = vadd.f32 %v3173_v52, %v4317_v27  ;;  %v1882_v56 = vadd.f32 %v3221_v53, %v4300_v26  ;;  %v1353_v57 = vpop.f32.mrb[23].mxu1  ;;  %v1873_v58 = vpop.f32.mrb[23].mxu0  ;;  %s4468_s12 = scalar_lea.sflag [#allocation15], %s490_s29  ;;  %s3653_s20 = scalar_lea.vmem %s4452_s13, 2048 }
 0x1fd   : > { %2829 = vst [vmem:[%s4355_s17] sm:$0xff] %v2828_v45   ;;  %2909 = vst [vmem:[%s4359_s3] sm:$0xff] %v2908_v46   ;;  %v1354_v61 = vadd.f32 %v4317_v27, %v1353_v57  ;;  %v1874_v62 = vadd.f32 %v4300_v26, %v1873_v58  ;;  %v3176_v3 = vpop.f32.mrb[24].mxu1  ;;  %v3224_v4 = vpop.f32.mrb[24].mxu0  ;;  %p3654_p13 = scmp.ne.s32.totalorder %s4452_s13, %s3653_s20  ;;  %s3792_s15 = smov [#allocation14]  }
 0x1fe   : > { %v2843_v63 = vpack.c.bf16 %v1362_v55, %v1359_v54  ;;  %v2923_v0 = vpack.c.bf16 %v1882_v56, %v1879_v49  ;;  %v1895_v5 = vadd.f32 %v3224_v4, %v4300_v26  ;;  %v1366_v6 = vpop.f32.mrb[25].mxu1  ;;  %v1886_v7 = vpop.f32.mrb[25].mxu0  ;;  %v1375_v11 = vadd.f32 %v3176_v3, %v4317_v27  ;;  %s3657_s6 = sshll.u32 %s3792_s15, 4  ;;  %s3658_s6 = int_to_ptr.vmem [resolvable:$false] %s3657_s6 }
 0x1ff   : > { %v2838_v1 = vpack.c.bf16 %v1354_v61, %v1351_v59  ;;  %v2918_v2 = vpack.c.bf16 %v1874_v62, %v1871_v60  ;;  %v3177_v9 = vpop.f32.mrb[26].mxu1  ;;  %v3225_v10 = vpop.f32.mrb[26].mxu0  ;;  %v1367_v16 = vadd.f32 %v4317_v27, %v1366_v6  ;;  %v1887_v17 = vadd.f32 %v4300_v26, %v1886_v7  ;;  %p3655_p5 = pnand %p3654_p13, %p4632_p10  ;;  %s3659_s8 = scalar_lea.vmem %s3658_s6, 4096 }
 0x200   : > { %3002 = vst [vmem:[%s4355_s17 + $0x18] sm:$0xff] %v2843_v63   ;;  %3017 = vst [vmem:[%s4359_s3 + $0x18] sm:$0xff] %v2923_v0   ;;  %v1378_v12 = vadd.f32 %v3177_v9, %v4317_v27  ;;  %v1898_v13 = vadd.f32 %v3225_v10, %v4300_v26  ;;  %v1369_v14 = vpop.f32.mrb[27].mxu1  ;;  %v1889_v15 = vpop.f32.mrb[27].mxu0  ;;  %p3660_p6 = scmp.lt.s32.totalorder %s4452_s13, %s3658_s6  ;;  %p3661_p7 = scmp.lt.s32.totalorder %s3659_s8, %s3653_s20 }
 0x201   : > { %3001 = vst [vmem:[%s4355_s17 + $0x10] sm:$0xff] %v2838_v1   ;;  %3016 = vst [vmem:[%s4359_s3 + $0x10] sm:$0xff] %v2918_v2   ;;  %v1370_v18 = vadd.f32 %v4317_v27, %v1369_v14  ;;  %v1890_v19 = vadd.f32 %v4300_v26, %v1889_v15  ;;  %v3180_v24 = vpop.f32.mrb[28].mxu1  ;;  %v3228_v25 = vpop.f32.mrb[28].mxu0  ;;  %s4450_s21 = scalar_lea.hbm %s4633_s14, %s4290_s24  ;;  %s4460_s30 = scalar_lea.hbm %s4634_s25, %s4290_s24 }
 0x202   : > { %v2853_v20 = vpack.c.bf16 %v1378_v12, %v1375_v11  ;;  %v2933_v21 = vpack.c.bf16 %v1898_v13, %v1895_v5  ;;  %v1911_v8 = vadd.f32 %v3228_v25, %v4300_v26  ;;  %v1382_v28 = vpop.f32.mrb[29].mxu1  ;;  %v1902_v29 = vpop.f32.mrb[29].mxu0  ;;  %v1391_v32 = vadd.f32 %v3180_v24, %v4317_v27  ;;  %p3656_p3 = pneg %p3655_p5  ;;  %p3662_p9 = por %p3661_p7, %p3660_p6 }
 0x203   : > { %v2848_v22 = vpack.c.bf16 %v1370_v18, %v1367_v16  ;;  %v2928_v23 = vpack.c.bf16 %v1890_v19, %v1887_v17  ;;  %v3181_v30 = vpop.f32.mrb[30].mxu1  ;;  %v3229_v31 = vpop.f32.mrb[30].mxu0  ;;  %v1383_v37 = vadd.f32 %v4317_v27, %v1382_v28  ;;  %v1903_v38 = vadd.f32 %v4300_v26, %v1902_v29 }
 0x204   : > { %3004 = vst [vmem:[%s4355_s17 + $0x28] sm:$0xff] %v2853_v20   ;;  %3019 = vst [vmem:[%s4359_s3 + $0x28] sm:$0xff] %v2933_v21   ;;  %v1394_v33 = vadd.f32 %v3181_v30, %v4317_v27  ;;  %v1914_v34 = vadd.f32 %v3229_v31, %v4300_v26  ;;  %v1385_v35 = vpop.f32.mrb[31].mxu1  ;;  %v1905_v36 = vpop.f32.mrb[31].mxu0  ;;  %p3663_p8 = pnand %p3662_p9, %p3656_p3 }
 0x205   : > { %3003 = vst [vmem:[%s4355_s17 + $0x20] sm:$0xff] %v2848_v22   ;;  %3018 = vst [vmem:[%s4359_s3 + $0x20] sm:$0xff] %v2928_v23   ;;  %v1386_v39 = vadd.f32 %v4317_v27, %v1385_v35  ;;  %v1906_v40 = vadd.f32 %v4300_v26, %v1905_v36 }
 0x206   : > { %v2863_v41 = vpack.c.bf16 %v1394_v33, %v1391_v32  ;;  %v2943_v42 = vpack.c.bf16 %v1914_v34, %v1911_v8 }
 0x207   : > { %v2858_v43 = vpack.c.bf16 %v1386_v39, %v1383_v37  ;;  %v2938_v44 = vpack.c.bf16 %v1906_v40, %v1903_v38 }
 0x208   : > { %3006 = vst [vmem:[%s4355_s17 + $0x38] sm:$0xff] %v2863_v41   ;;  %3021 = vst [vmem:[%s4359_s3 + $0x38] sm:$0xff] %v2943_v42  }
 0x209   : > { %3005 = vst [vmem:[%s4355_s17 + $0x30] sm:$0xff] %v2858_v43   ;;  %3020 = vst [vmem:[%s4359_s3 + $0x30] sm:$0xff] %v2938_v44   ;;  %v3184_v45 = vpop.f32.mrb[32].mxu1  ;;  %v3232_v46 = vpop.f32.mrb[32].mxu0 }
 0x20a   : > { %v1927_v47 = vadd.f32 %v3232_v46, %v4300_v26  ;;  %v1398_v48 = vpop.f32.mrb[33].mxu1  ;;  %v1918_v49 = vpop.f32.mrb[33].mxu0  ;;  %v1407_v52 = vadd.f32 %v3184_v45, %v4317_v27 }
 0x20b   : > { %v3185_v50 = vpop.f32.mrb[34].mxu1  ;;  %v3233_v51 = vpop.f32.mrb[34].mxu0  ;;  %v1399_v57 = vadd.f32 %v4317_v27, %v1398_v48  ;;  %v1919_v58 = vadd.f32 %v4300_v26, %v1918_v49 }
 0x20c   : > { %v1410_v53 = vadd.f32 %v3185_v50, %v4317_v27  ;;  %v1930_v54 = vadd.f32 %v3233_v51, %v4300_v26  ;;  %v1401_v55 = vpop.f32.mrb[35].mxu1  ;;  %v1921_v56 = vpop.f32.mrb[35].mxu0 }
 0x20d   : > { %v1402_v59 = vadd.f32 %v4317_v27, %v1401_v55  ;;  %v1922_v60 = vadd.f32 %v4300_v26, %v1921_v56 }
 0x20e   : > { %v2873_v61 = vpack.c.bf16 %v1410_v53, %v1407_v52  ;;  %v2953_v62 = vpack.c.bf16 %v1930_v54, %v1927_v47 }
 0x20f   : > { %v2868_v63 = vpack.c.bf16 %v1402_v59, %v1399_v57  ;;  %v2948_v0 = vpack.c.bf16 %v1922_v60, %v1919_v58 }
 0x210   : > { %3008 = vst [vmem:[%s4355_s17 + $0x48] sm:$0xff] %v2873_v61   ;;  %3023 = vst [vmem:[%s4359_s3 + $0x48] sm:$0xff] %v2953_v62  }
 0x211   : > { %3007 = vst [vmem:[%s4355_s17 + $0x40] sm:$0xff] %v2868_v63   ;;  %3022 = vst [vmem:[%s4359_s3 + $0x40] sm:$0xff] %v2948_v0   ;;  %v3188_v1 = vpop.f32.mrb[36].mxu1  ;;  %v3236_v2 = vpop.f32.mrb[36].mxu0 }
 0x212   : > { %v1943_v3 = vadd.f32 %v3236_v2, %v4300_v26  ;;  %v1414_v4 = vpop.f32.mrb[37].mxu1  ;;  %v1934_v5 = vpop.f32.mrb[37].mxu0  ;;  %v1423_v9 = vadd.f32 %v3188_v1, %v4317_v27 }
 0x213   : > { %v3189_v6 = vpop.f32.mrb[38].mxu1  ;;  %v3237_v7 = vpop.f32.mrb[38].mxu0  ;;  %v1415_v14 = vadd.f32 %v4317_v27, %v1414_v4  ;;  %v1935_v15 = vadd.f32 %v4300_v26, %v1934_v5 }
 0x214   : > { %v1426_v10 = vadd.f32 %v3189_v6, %v4317_v27  ;;  %v1946_v11 = vadd.f32 %v3237_v7, %v4300_v26  ;;  %v1417_v12 = vpop.f32.mrb[39].mxu1  ;;  %v1937_v13 = vpop.f32.mrb[39].mxu0 }
 0x215   : > { %v1418_v16 = vadd.f32 %v4317_v27, %v1417_v12  ;;  %v1938_v17 = vadd.f32 %v4300_v26, %v1937_v13 }
 0x216   : > { %v2883_v18 = vpack.c.bf16 %v1426_v10, %v1423_v9  ;;  %v2963_v19 = vpack.c.bf16 %v1946_v11, %v1943_v3 }
 0x217   : > { %v2878_v20 = vpack.c.bf16 %v1418_v16, %v1415_v14  ;;  %v2958_v21 = vpack.c.bf16 %v1938_v17, %v1935_v15 }
 0x218   : > { %3010 = vst [vmem:[%s4355_s17 + $0x58] sm:$0xff] %v2883_v18   ;;  %3025 = vst [vmem:[%s4359_s3 + $0x58] sm:$0xff] %v2963_v19  }
 0x219   : > { %3009 = vst [vmem:[%s4355_s17 + $0x50] sm:$0xff] %v2878_v20   ;;  %3024 = vst [vmem:[%s4359_s3 + $0x50] sm:$0xff] %v2958_v21   ;;  %v3192_v22 = vpop.f32.mrb[40].mxu1  ;;  %v3240_v23 = vpop.f32.mrb[40].mxu0 }
 0x21a   : > { %v1959_v24 = vadd.f32 %v3240_v23, %v4300_v26  ;;  %v1430_v25 = vpop.f32.mrb[41].mxu1  ;;  %v1950_v8 = vpop.f32.mrb[41].mxu0  ;;  %v1439_v30 = vadd.f32 %v3192_v22, %v4317_v27 }
 0x21b   : > { %v3193_v28 = vpop.f32.mrb[42].mxu1  ;;  %v3241_v29 = vpop.f32.mrb[42].mxu0  ;;  %v1431_v35 = vadd.f32 %v4317_v27, %v1430_v25  ;;  %v1951_v36 = vadd.f32 %v4300_v26, %v1950_v8 }
 0x21c   : > { %v1442_v31 = vadd.f32 %v3193_v28, %v4317_v27  ;;  %v1962_v32 = vadd.f32 %v3241_v29, %v4300_v26  ;;  %v1433_v33 = vpop.f32.mrb[43].mxu1  ;;  %v1953_v34 = vpop.f32.mrb[43].mxu0 }
 0x21d   : > { %v1434_v37 = vadd.f32 %v4317_v27, %v1433_v33  ;;  %v1954_v38 = vadd.f32 %v4300_v26, %v1953_v34 }
 0x21e   : > { %v2893_v39 = vpack.c.bf16 %v1442_v31, %v1439_v30  ;;  %v2973_v40 = vpack.c.bf16 %v1962_v32, %v1959_v24 }
 0x21f   : > { %v2888_v41 = vpack.c.bf16 %v1434_v37, %v1431_v35  ;;  %v2968_v42 = vpack.c.bf16 %v1954_v38, %v1951_v36 }
 0x220   : > { %3012 = vst [vmem:[%s4355_s17 + $0x68] sm:$0xff] %v2893_v39   ;;  %3027 = vst [vmem:[%s4359_s3 + $0x68] sm:$0xff] %v2973_v40  }
 0x221   : > { %3011 = vst [vmem:[%s4355_s17 + $0x60] sm:$0xff] %v2888_v41   ;;  %3026 = vst [vmem:[%s4359_s3 + $0x60] sm:$0xff] %v2968_v42   ;;  %v3196_v43 = vpop.f32.mrb[44].mxu1  ;;  %v3244_v44 = vpop.f32.mrb[44].mxu0 }
 0x222   : > { %v1975_v45 = vadd.f32 %v3244_v44, %v4300_v26  ;;  %v1446_v46 = vpop.f32.mrb[45].mxu1  ;;  %v1966_v47 = vpop.f32.mrb[45].mxu0  ;;  %v1455_v50 = vadd.f32 %v3196_v43, %v4317_v27 }
 0x223   : > { %v3197_v48 = vpop.f32.mrb[46].mxu1  ;;  %v3245_v49 = vpop.f32.mrb[46].mxu0  ;;  %v1447_v55 = vadd.f32 %v4317_v27, %v1446_v46  ;;  %v1967_v56 = vadd.f32 %v4300_v26, %v1966_v47 }
 0x224   : > { %v1458_v51 = vadd.f32 %v3197_v48, %v4317_v27  ;;  %v1978_v52 = vadd.f32 %v3245_v49, %v4300_v26  ;;  %v1449_v53 = vpop.f32.mrb[47].mxu1  ;;  %v1969_v54 = vpop.f32.mrb[47].mxu0 }
 0x225   : > { %v1450_v57 = vadd.f32 %v4317_v27, %v1449_v53  ;;  %v1970_v58 = vadd.f32 %v4300_v26, %v1969_v54 }
 0x226   : > { %v2903_v59 = vpack.c.bf16 %v1458_v51, %v1455_v50  ;;  %v2983_v60 = vpack.c.bf16 %v1978_v52, %v1975_v45 }
 0x227   : > { %v2898_v61 = vpack.c.bf16 %v1450_v57, %v1447_v55  ;;  %v2978_v62 = vpack.c.bf16 %v1970_v58, %v1967_v56 }
 0x228   : > { %3014 = vst [vmem:[%s4355_s17 + $0x78] sm:$0xff] %v2903_v59   ;;  %3029 = vst [vmem:[%s4359_s3 + $0x78] sm:$0xff] %v2983_v60  }
 0x229   : > { %3013 = vst [vmem:[%s4355_s17 + $0x70] sm:$0xff] %v2898_v61   ;;  %3028 = vst [vmem:[%s4359_s3 + $0x70] sm:$0xff] %v2978_v62  }
 0x22a   : > { %3666 = shalt.err (!%p3663_p8)
}
 0x22b   : > { %s3667_s23 = scalar_lea.hbm %s4450_s21, 2048  ;;  %s3671_s17 = scalar_lea.hbm %s4633_s14, 4096 }
 0x22c   : > { %p3668_p4 = scmp.ne.s32.totalorder %s4450_s21, %s3667_s23  ;;  %p3672_p11 = scmp.lt.u32.totalorder %s4450_s21, %s4633_s14 }
 0x22d   : > { %p3673_p1 = scmp.lt.u32.totalorder %s3671_s17, %s3667_s23  ;;  %p3675_p13 = scmp.lt.u32.totalorder %s3667_s23, %s4450_s21 }
 0x22e   : > { %p3669_p12 = pnand %p3668_p4, %p4632_p10 }
 0x22f   : > { %p3674_p0 = por %p3673_p1, %p3672_p11 }
 0x230   : > { %p3670_p2 = pneg %p3669_p12 }
 0x231   : > { %p3676_p5 = por %p3675_p13, %p3674_p0 }
 0x233   : > { %p3677_p3 = pnand %p3676_p5, %p3670_p2 }
 0x235   : > { %3680 = shalt.err (!%p3677_p3)
}
 0x236   : > { %3281 = dma.vmem_to_hbm [thread:$0]  (%p4632_p10), %s4452_s13, 2048, %s4450_s21, %s4468_s12, %s3790_s27, %s3790_s27, %s3791_s22  }
 0x237   : > { %s3681_s28 = scalar_lea.vmem %s4462_s10, 2048  ;;  %s3793_s16 = smov [#allocation16]  }
 0x238   : > { %p3682_p6 = scmp.ne.s32.totalorder %s4462_s10, %s3681_s28  ;;  %s3685_s26 = sshll.u32 %s3793_s16, 4  ;;  %s3686_s26 = int_to_ptr.vmem [resolvable:$false] %s3685_s26 }
 0x239   : > { %s3687_s20 = scalar_lea.vmem %s3686_s26, 4096  ;;  %p3688_p8 = scmp.lt.s32.totalorder %s4462_s10, %s3686_s26 }
 0x23a   : > { %p3683_p7 = pnand %p3682_p6, %p4632_p10  ;;  %p3689_p4 = scmp.lt.s32.totalorder %s3687_s20, %s3681_s28 }
 0x23c   : > { %p3684_p9 = pneg %p3683_p7  ;;  %p3690_p12 = por %p3689_p4, %p3688_p8 }
 0x23e   : > { %p3691_p2 = pnand %p3690_p12, %p3684_p9 }
 0x240   : > { %3694 = shalt.err (!%p3691_p2)
}
 0x241   : > { %s3695_s13 = scalar_lea.hbm %s4460_s30, 2048  ;;  %s3699_s6 = scalar_lea.hbm %s4634_s25, 4096 }
 0x242   : > { %p3696_p11 = scmp.ne.s32.totalorder %s4460_s30, %s3695_s13  ;;  %p3700_p13 = scmp.lt.u32.totalorder %s4460_s30, %s4634_s25 }
 0x243   : > { %p3701_p5 = scmp.lt.u32.totalorder %s3699_s6, %s3695_s13  ;;  %p3703_p6 = scmp.lt.u32.totalorder %s3695_s13, %s4460_s30 }
 0x244   : > { %p3697_p1 = pnand %p3696_p11, %p4632_p10 }
 0x245   : > { %p3702_p3 = por %p3701_p5, %p3700_p13 }
 0x246   : > { %p3698_p0 = pneg %p3697_p1 }
 0x247   : > { %p3704_p7 = por %p3703_p6, %p3702_p3 }
 0x249   : > { %p3705_p9 = pnand %p3704_p7, %p3698_p0 }
 0x24b   : > { %3708 = shalt.err (!%p3705_p9)
}
 0x24c   : > { %3282 = dma.vmem_to_hbm [thread:$0]  (%p4632_p10), %s4462_s10, 2048, %s4460_s30, %s4468_s12, %s3790_s27, %s3790_s27, %s3791_s22  }
 0x24d PF: > { %s4635_s29 = sld [smem:[#allocation23_spill]]  ;;  %s4636_s24 = sld [smem:[#allocation28_spill]] }
 0x24e   : > { %s4637_s17 = sld [smem:[#allocation26_spill]] }
 0x253   : > { %s2218_s3 = sand.u32 1, %s4635_s29   ;;  %p4638_p8 = scmp.ne.s32.totalorder %s4636_s24, 0 }
 0x254   : > { %p4639_p4 = scmp.ge.s32.totalorder %s4637_s17, 2  ;;  %s2219_s9 = scalar_lea.sflag [#allocation4], %s2218_s3 }
 0x256   : > { %p3307_p12 = pnand %p4639_p4, %p4638_p8 }
 0x258   : > { %3750 = dma.done.wait (!%p3307_p12), %s2219_s9, 2048  }
 0x259   : > { %3752 = vsyncadd (!%p3307_p12), %s2219_s9, 4294965248  ;;  %s4640_s1 = sadd.s32 4294967294, %s4637_s17  }
 0x25a   : > { %s2227_s28 = sand.u32 1, %s4640_s1  }
 0x25b   : > { %s2228_s16 = scalar_lea.sflag [#allocation15], %s2227_s28 }
 0x25c   : > { %3754 = dma.done.wait (!%p3307_p12), %s2228_s16, 4096  }
 0x25d   : > { %3756 = vsyncadd (!%p3307_p12), %s2228_s16, 4294963200  ;;  %s36_s22 = sadd.s32 1, %s4637_s17   ;;  %s4641_s27 = sld [smem:[#allocation30_spill]] }
 0x25e   : > { %p33_p10 = scmp.ge.s32.totalorder %s36_s22, 4   ;;  %s4642_s20 = sld [smem:[#allocation25_spill]] }
 0x25f   : > { %s4643_s21 = sld [smem:[#allocation29_spill]]  ;;  %s4644_s17 = smov %s3763_s18 }
 0x260   : > { %s4645_s18 = smov %s3767_s19  ;;  %35 = sbr.rel (!%p33_p10) target bundleno = 20 (0x14), region = 169 }
 0x263   : > { %s4646_s19 = smov %s4641_s27 }
 0x267   :  { %2242 = vsyncpa [#allocation3], 1 }
 0x268   :  { %2244 = vsyncpa [#allocation3 + $0x1], 1 }
 0x269   :  { %2245 = vsyncpa [#allocation6], 1 }
 0x26a   :  { %2247 = vsyncpa [#allocation6 + $0x1], 1 }
 0x26b   :  { %2248 = vsyncpa [#allocation9], 1 }
 0x26c   :  { %2249 = vsyncpa [#allocation12], 1 }
 0x26d   :  { %2250 = vsyncpa [#allocation4], 1 }
 0x26e   :  { %2252 = vsyncpa [#allocation4 + $0x1], 1 }
 0x26f   :  { %2253 = vsyncpa [#allocation15], 1 }
 0x270   :  { %2255 = vsyncpa [#allocation15 + $0x1], 1 }

</bundles_post_ra>
